<compile_context>
chip_gen: v7x
topology: tpu7x:2x2x1
jax: 0.10.0
libtpu: 0.0.40
codegen_flags: <defaults>
</compile_context>

<pallas_src>
import functools

import jax
import jax.numpy as jnp
from jax import lax
from jax.experimental import pallas as pl
from jax.experimental.pallas import tpu as pltpu


# ----------------------- generation-aware sizing ---------------------------- #

def _phys_vmem_bytes():
    try:
        info = pltpu.get_tpu_info()
        v = getattr(info, "vmem_capacity_bytes", None)
        if v:
            return int(v)
    except Exception:
        pass
    return 128 * 1024 * 1024


_PHYS_VMEM = _phys_vmem_bytes()
_SMALL_VMEM = _PHYS_VMEM <= 64 * 1024 * 1024            # v7x: 64 MiB per TC
_VMEM_LIMIT = (48 if _SMALL_VMEM else 96) * 1024 * 1024
_ROW_TILE_TARGET = 256 if _SMALL_VMEM else 512
_Q_TILE_TARGET = 256 if _SMALL_VMEM else 512


def _mosaic(*sem):
    return pltpu.CompilerParams(dimension_semantics=sem,
                                vmem_limit_bytes=_VMEM_LIMIT)


def _pick_tile(n, target):
    for t in (512, 256, 128, 64, 32, 16, 8):
        if t <= target and n % t == 0:
            return t
    return n


# ------------------------- feature probes (run once, eagerly) --------------- #

def _probe_strided_roll():
    """Check that pltpu.roll(..., stride=1, stride_axis=0) rolls row r by r."""
    def kern(x_ref, o_ref):
        o_ref[...] = pltpu.roll(x_ref[...], 0, axis=1, stride=1, stride_axis=0)
    try:
        x = jnp.arange(8 * 128, dtype=jnp.float32).reshape(8, 128)
        got = pl.pallas_call(
            kern, out_shape=jax.ShapeDtypeStruct((8, 128), jnp.float32))(x)
        got = jax.block_until_ready(got)
        want = jnp.stack([jnp.roll(x[i], i) for i in range(8)])
        return bool(jnp.allclose(got, want))
    except Exception:
        return False


def _probe_buffered1():
    """Check that pipeline_mode=pl.Buffered(1) (resident single-buffering) works."""
    def kern(x_ref, o_ref):
        o_ref[...] = x_ref[...] * 2.0
    try:
        out = pl.pallas_call(
            kern,
            grid=(2,),
            in_specs=[pl.BlockSpec((8, 128), lambda i: (0, 0),
                                   pipeline_mode=pl.Buffered(1))],
            out_specs=pl.BlockSpec((8, 128), lambda i: (i, 0)),
            out_shape=jax.ShapeDtypeStruct((16, 128), jnp.float32),
        )(jnp.ones((8, 128), jnp.float32))
        out = jax.block_until_ready(out)
        return bool(jnp.allclose(out, 2.0))
    except Exception:
        return False


_STRIDED_ROLL_OK = _probe_strided_roll()
_BUFFERED1_OK = _probe_buffered1()


def _resident_spec(block_shape, index_map):
    """BlockSpec for grid-invariant (resident) inputs; single-buffer if possible."""
    if _BUFFERED1_OK:
        return pl.BlockSpec(block_shape, index_map, pipeline_mode=pl.Buffered(1))
    return pl.BlockSpec(block_shape, index_map)


# ----------------------------- qkv projection ------------------------------ #

def _qkv_kernel(x_ref, w_ref, o_ref):
    # [ts, d_model] @ [d_model, 3*H*Dh]  (bf16 MXU, f32 accumulate, bf16 store)
    o_ref[...] = jnp.dot(x_ref[...].astype(jnp.bfloat16), w_ref[...],
                         preferred_element_type=jnp.float32).astype(jnp.bfloat16)


def _qkv_proj(x2d, w_qkv_bf16, ts):
    s, d_model = x2d.shape
    n_out = w_qkv_bf16.shape[1]
    return pl.pallas_call(
        _qkv_kernel,
        grid=(s // ts,),
        in_specs=[pl.BlockSpec((ts, d_model), lambda i: (i, 0)),
                  _resident_spec((d_model, n_out), lambda i: (0, 0))],
        out_specs=pl.BlockSpec((ts, n_out), lambda i: (i, 0)),
        out_shape=jax.ShapeDtypeStruct((s, n_out), jnp.bfloat16),
        compiler_params=_mosaic("parallel"),
    )(x2d, w_qkv_bf16)


# --------------------- in-kernel exact relative shift ---------------------- #

def _roll_rows_by_row_index(z):
    """a[r, :] = roll(z[r, :], r)  (right-rotate row r by r lanes)."""
    tq, _ = z.shape
    if tq == 1:
        return z
    if _STRIDED_ROLL_OK:
        return pltpu.roll(z, 0, axis=1, stride=1, stride_axis=0)
    # Fallback: O(log tq) roll + select ladder (only when strided roll is absent).
    row = lax.broadcasted_iota(jnp.int32, (tq, 1), 0)
    a = z
    for b in range(max(1, (tq - 1).bit_length())):
        amt = 1 << b
        a = jnp.where(((row >> b) & 1) > 0, pltpu.roll(a, amt, axis=1), a)
    return a


def _rel_shift_tile(z, row0, qlen, single_tile):
    """Exact Transformer-XL _rel_shift of one [tq, klen] score tile.

    For global query row i = row0 + r and key column j:
      out[i, j] = z[i, j + qlen - 1 - i]   for j <= klen - qlen + i
                = 0                        for j == klen - qlen + i + 1
                = wrap value (row i+1)     otherwise (artifacts of the PyTorch
                  pad/view trick; always masked by a causal mask)
    NOTE: when qlen is split into multiple q-tiles, the wrap values for the last
    row of a tile are taken from row 0 of the same tile (they are always in the
    masked future region for causal masks; exact parity holds for a single tile).
    """
    tq, klen = z.shape
    a = _roll_rows_by_row_index(z)                  # per-row amount  + r
    base = (klen - qlen + 1) % klen
    if base:
        a = pltpu.roll(a, base, axis=1)             # + (klen - qlen + 1)
    if not single_tile:
        a = pltpu.roll(a, row0, axis=1)             # + q-tile row offset (dynamic)
    # row r <- row r+1 (in-tile): supplies the pad/view "wrap" values.
    c = pltpu.roll(a, tq - 1, axis=0) if tq > 1 else a
    col = lax.broadcasted_iota(jnp.int32, (tq, klen), 1)
    row = lax.broadcasted_iota(jnp.int32, (tq, klen), 0)
    if not single_tile:
        row = row + row0
    lim = row + (klen - qlen)
    return jnp.where(col <= lim, a,
                     jnp.where(col == lim + 1, jnp.float32(0.0), c))


# ------------------- fused attention + o_net + add&norm -------------------- #

def _fused_attn_kernel(n_head, d_head, scale, n_qt,
                       q_ref, k_ref, v_ref, x_ref,
                       remb_ref, rwu_ref, rbias_ref, mask_ref,
                       wo_ref, g_ref, b_ref, o_ref, av_ref):
    tq = q_ref.shape[2]
    klen = k_ref.shape[2]
    qlen = n_qt * tq
    dn = (((1,), (1,)), ((), ()))                  # contract over d_head
    neg = jnp.float32(-1e30)                       # -inf surrogate; exp() -> 0
    masked = mask_ref[...] != 0                    # [tq, klen]  (hoisted)
    row0 = (pl.program_id(1) * tq) if n_qt > 1 else 0

    # TODO(synk): for very large n_head switch this static unroll to lax.fori_loop
    # (per-iteration temporaries already die here; only the av scratch survives).
    for h in range(n_head):
        qh32 = q_ref[0, h].astype(jnp.float32) * scale          # [tq, dh]
        rwq = (qh32 + rwu_ref[h:h + 1, :]).astype(jnp.bfloat16)  # u pre-scaled
        # AC = (q+u) k^T, B_ = q r_emb^T  (bf16 MXU, f32 accumulate)
        ac = lax.dot_general(rwq, k_ref[0, h], dn,
                             preferred_element_type=jnp.float32)  # [tq, klen]
        bmat = lax.dot_general(qh32.astype(jnp.bfloat16), remb_ref[h], dn,
                               preferred_element_type=jnp.float32)
        bd = _rel_shift_tile(bmat + rbias_ref[h:h + 1, :], row0, qlen, n_qt == 1)

        s = jnp.where(masked, neg, ac + bd)
        m = jnp.max(s, axis=-1, keepdims=True)
        e = jnp.exp(s - m)
        p = e * pl.reciprocal(jnp.sum(e, axis=-1, keepdims=True), approx=True)

        av = jnp.dot(p.astype(jnp.bfloat16), v_ref[0, h],
                     preferred_element_type=jnp.float32)          # [tq, dh]
        av_ref[:, h * d_head:(h + 1) * d_head] = av.astype(jnp.bfloat16)

    # single hd-wide o_net projection (full MXU contraction), residual, post-LN
    attn_out = jnp.dot(av_ref[...], wo_ref[...],
                       preferred_element_type=jnp.float32)        # [tq, d_model]
    y = x_ref[0] + attn_out
    mu = jnp.mean(y, axis=-1, keepdims=True)
    var = jnp.mean((y - mu) ** 2, axis=-1, keepdims=True)
    o_ref[0] = ((y - mu) * lax.rsqrt(var + 1e-5)) * g_ref[...] + b_ref[...]


def _fused_attention(q_h, k_h, v_h, x_bq, remb, rwu, rbias, mask_i8, w_o_bf16,
                     ln_g, ln_b, *, n_head, d_head, tq):
    bsz, _, qlen, _ = q_h.shape
    klen = k_h.shape[2]
    d_model = x_bq.shape[2]
    hd = n_head * d_head
    n_qt = qlen // tq
    kern = functools.partial(_fused_attn_kernel, n_head, d_head,
                             1.0 / (d_head ** 0.5), n_qt)
    return pl.pallas_call(
        kern,
        grid=(bsz, n_qt),
        in_specs=[
            pl.BlockSpec((1, n_head, tq, d_head), lambda b, qi: (b, 0, qi, 0)),
            pl.BlockSpec((1, n_head, klen, d_head), lambda b, qi: (b, 0, 0, 0)),
            pl.BlockSpec((1, n_head, klen, d_head), lambda b, qi: (b, 0, 0, 0)),
            pl.BlockSpec((1, tq, d_model), lambda b, qi: (b, qi, 0)),
            _resident_spec((n_head, klen, d_head), lambda b, qi: (0, 0, 0)),
            _resident_spec((n_head, d_head), lambda b, qi: (0, 0)),
            _resident_spec((n_head, klen), lambda b, qi: (0, 0)),
            pl.BlockSpec((tq, klen), lambda b, qi: (qi, 0)),
            _resident_spec((hd, d_model), lambda b, qi: (0, 0)),
            _resident_spec((1, d_model), lambda b, qi: (0, 0)),
            _resident_spec((1, d_model), lambda b, qi: (0, 0)),
        ],
        out_specs=pl.BlockSpec((1, tq, d_model), lambda b, qi: (b, qi, 0)),
        out_shape=jax.ShapeDtypeStruct((bsz, qlen, d_model), jnp.float32),
        scratch_shapes=[pltpu.VMEM((tq, hd), jnp.bfloat16)],
        compiler_params=_mosaic("parallel", "parallel"),
    )(q_h, k_h, v_h, x_bq, remb, rwu, rbias, mask_i8, w_o_bf16, ln_g, ln_b)


# ---------------------------- PositionwiseFF ------------------------------- #

def _ff_kernel(x_ref, g_ref, b_ref, w1_ref, b1_ref, w2_ref, b2_ref, o_ref):
    # CoreNet(layer_norm(inp))   (no residual, per the given PositionwiseFF)
    x = x_ref[...]
    mu = jnp.mean(x, axis=-1, keepdims=True)
    var = jnp.mean((x - mu) ** 2, axis=-1, keepdims=True)
    xn = ((x - mu) * lax.rsqrt(var + 1e-5)) * g_ref[...] + b_ref[...]
    h = jnp.dot(xn.astype(jnp.bfloat16), w1_ref[...],
                preferred_element_type=jnp.float32) + b1_ref[...]
    h = jnp.maximum(h, 0.0)
    o_ref[...] = jnp.dot(h.astype(jnp.bfloat16), w2_ref[...],
                         preferred_element_type=jnp.float32) + b2_ref[...]


def _positionwise_ff(x2d, ln_g, ln_b, w1_bf16, b1, w2_bf16, b2, ts):
    s, d_model = x2d.shape
    d_inner = w1_bf16.shape[1]
    # TODO(synk): for very large d_inner on v7x, add an inner d_inner grid axis
    # with an f32 accumulator instead of relying on the smaller row tile alone.
    return pl.pallas_call(
        _ff_kernel,
        grid=(s // ts,),
        in_specs=[
            pl.BlockSpec((ts, d_model), lambda i: (i, 0)),
            _resident_spec((1, d_model), lambda i: (0, 0)),
            _resident_spec((1, d_model), lambda i: (0, 0)),
            _resident_spec((d_model, d_inner), lambda i: (0, 0)),
            _resident_spec((1, d_inner), lambda i: (0, 0)),
            _resident_spec((d_inner, d_model), lambda i: (0, 0)),
            _resident_spec((1, d_model), lambda i: (0, 0)),
        ],
        out_specs=pl.BlockSpec((ts, d_model), lambda i: (i, 0)),
        out_shape=jax.ShapeDtypeStruct((s, d_model), jnp.float32),
        compiler_params=_mosaic("parallel"),
    )(x2d, ln_g, ln_b, w1_bf16, b1, w2_bf16, b2)


# ------------------------------ layer forward ------------------------------ #

def rel_learnable_decoder_layer(params, dec_inp, r_emb, r_w_bias, r_bias,
                                dec_attn_mask=None, mems=None,
                                *, n_head, d_head):
    if mems is not None:
        # TODO(synk): recurrence-memory (mems) concatenation path not implemented.
        raise NotImplementedError("mems path not implemented")

    qlen, bsz, d_model = dec_inp.shape
    klen = qlen
    hd = n_head * d_head
    s = bsz * qlen
    scale = 1.0 / (d_head ** 0.5)

    # Batch-major working layout: each per-batch attention block is one
    # contiguous lane-dense BlockSpec tile.
    x_bq = jnp.transpose(dec_inp, (1, 0, 2)).astype(jnp.float32)   # [b, q, d_model]
    x2d = x_bq.reshape(s, d_model)

    # qkv projection (row-tiled, bf16 weights + bf16 output)
    ts = _pick_tile(s, _ROW_TILE_TARGET)
    wh = _qkv_proj(x2d, params["w_qkv"].astype(jnp.bfloat16), ts)  # [s, 3*hd] bf16
    # head-major regroup (layout plumbing in the wrapper, bf16 data)
    wh = wh.reshape(bsz, qlen, 3, n_head, d_head)
    wh = jnp.transpose(wh, (2, 0, 3, 1, 4))                        # [3, b, H, q, dh]
    q_h, k_h, v_h = wh[0], wh[1], wh[2]                            # [b, H, q, dh]

    # per-head relative tables (fetched once, resident); scale folded in
    remb = jnp.transpose(r_emb[-klen:], (1, 0, 2)).astype(jnp.bfloat16)  # [H, k, dh]
    rwu = (r_w_bias.astype(jnp.float32) * scale)                         # [H, dh]
    rbias = (jnp.transpose(r_bias[-klen:], (1, 0)).astype(jnp.float32)
             * scale)                                                    # [H, k]

    if dec_attn_mask is None:
        mask = jnp.zeros((qlen, klen), jnp.int8)
    else:
        # TODO(synk): per-batch 3-D attention masks are not supported
        # (batch-shared [qlen, klen] or [qlen, klen, 1] only).
        mask = (jnp.asarray(dec_attn_mask).reshape(qlen, klen) != 0).astype(jnp.int8)

    tq = _pick_tile(qlen, _Q_TILE_TARGET)
    # fused: scores + rel-shift + mask + softmax + P@V + o_net + residual + LN1
    attn_ln = _fused_attention(q_h, k_h, v_h, x_bq, remb, rwu, rbias, mask,
                               params["w_o"].astype(jnp.bfloat16),
                               params["ln1_g"], params["ln1_b"],
                               n_head=n_head, d_head=d_head, tq=tq)  # [b, q, dm]

    # PositionwiseFF: LayerNorm -> Linear -> ReLU -> Linear (row-tiled, fused)
    ff_out = _positionwise_ff(attn_ln.reshape(s, d_model),
                              params["ln2_g"], params["ln2_b"],
                              params["ff_w1"].astype(jnp.bfloat16), params["ff_b1"],
                              params["ff_w2"].astype(jnp.bfloat16), params["ff_b2"],
                              ts)

    return jnp.transpose(ff_out.reshape(bsz, qlen, d_model), (1, 0, 2))


# --------------------------- pure-JAX reference ----------------------------- #

def _ln_ref(x, g, b, eps=1e-5):
    mu = jnp.mean(x, axis=-1, keepdims=True)
    var = jnp.mean((x - mu) ** 2, axis=-1, keepdims=True)
    return (x - mu) / jnp.sqrt(var + eps) * g + b


def _rel_shift_ref(x):  # x: [q, k, b, n], literal port of PyTorch _rel_shift
    q, k, b, n = x.shape
    zp = jnp.zeros((q, 1, b, n), x.dtype)
    xp = jnp.concatenate([zp, x], axis=1).reshape(k + 1, q, b, n)
    return xp[1:].reshape(q, k, b, n)


def reference_forward(params, dec_inp, r_emb, r_w_bias, r_bias,
                      dec_attn_mask, n_head, d_head):
    qlen, bsz, d_model = dec_inp.shape
    klen = qlen
    scale = 1.0 / (d_head ** 0.5)
    w_heads = dec_inp @ params["w_qkv"]
    w_head_q, w_head_k, w_head_v = jnp.split(w_heads, 3, axis=-1)
    w_head_q = w_head_q.reshape(qlen, bsz, n_head, d_head)
    w_head_k = w_head_k.reshape(klen, bsz, n_head, d_head)
    w_head_v = w_head_v.reshape(klen, bsz, n_head, d_head)
    r_emb_k = r_emb[-klen:]
    r_bias_k = r_bias[-klen:]
    rw_head_q = w_head_q + r_w_bias[None, None]
    AC = jnp.einsum("ibnd,jbnd->ijbn", rw_head_q, w_head_k)
    B_ = jnp.einsum("ibnd,jnd->ijbn", w_head_q, r_emb_k)
    D_ = r_bias_k[None, :, None, :]
    BD = _rel_shift_ref(B_ + D_)
    attn_score = (AC + BD) * scale
    if dec_attn_mask is not None:
        m = jnp.asarray(dec_attn_mask).reshape(qlen, klen)
        attn_score = jnp.where(m[:, :, None, None], -jnp.inf, attn_score)
    attn_prob = jax.nn.softmax(attn_score, axis=1)
    attn_vec = jnp.einsum("ijbn,jbnd->ibnd", attn_prob, w_head_v)
    attn_vec = attn_vec.reshape(qlen, bsz, n_head * d_head)
    attn_out = attn_vec @ params["w_o"]
    out = _ln_ref(dec_inp + attn_out, params["ln1_g"][0], params["ln1_b"][0])
    core_in = _ln_ref(out, params["ln2_g"][0], params["ln2_b"][0])
    h = jax.nn.relu(core_in @ params["ff_w1"] + params["ff_b1"][0])
    return h @ params["ff_w2"] + params["ff_b2"][0]


# ----------------------------------- main ----------------------------------- #

if __name__ == "__main__":
    n_head, d_model, d_head, d_inner = 2, 16, 8, 32
    qlen, bsz = 8, 2
    klen = qlen

    key = jax.random.PRNGKey(0)
    ks = jax.random.split(key, 12)
    sc = 0.05
    params = dict(
        w_qkv=sc * jax.random.normal(ks[0], (d_model, 3 * n_head * d_head), jnp.float32),
        w_o=sc * jax.random.normal(ks[1], (n_head * d_head, d_model), jnp.float32),
        ln1_g=1.0 + 0.1 * jax.random.normal(ks[2], (1, d_model), jnp.float32),
        ln1_b=0.1 * jax.random.normal(ks[3], (1, d_model), jnp.float32),
        ff_w1=sc * jax.random.normal(ks[4], (d_model, d_inner), jnp.float32),
        ff_b1=sc * jax.random.normal(ks[5], (1, d_inner), jnp.float32),
        ff_w2=sc * jax.random.normal(ks[6], (d_inner, d_model), jnp.float32),
        ff_b2=sc * jax.random.normal(ks[7], (1, d_model), jnp.float32),
        ln2_g=1.0 + 0.1 * jax.random.normal(ks[8], (1, d_model), jnp.float32),
        ln2_b=0.1 * jax.random.normal(ks[9], (1, d_model), jnp.float32),
    )

    dk = jax.random.split(ks[10], 4)
    dec_inp = jax.random.normal(dk[0], (qlen, bsz, d_model), jnp.float32)
    r_emb = 0.1 * jax.random.normal(dk[1], (klen, n_head, d_head), jnp.float32)
    r_w_bias = 0.1 * jax.random.normal(dk[2], (n_head, d_head), jnp.float32)
    r_bias = 0.1 * jax.random.normal(dk[3], (klen, n_head), jnp.float32)
    dec_attn_mask = jnp.triu(jnp.ones((qlen, klen), jnp.float32), k=1) > 0  # causal

    layer = jax.jit(functools.partial(rel_learnable_decoder_layer,
                                      n_head=n_head, d_head=d_head))
    out = layer(params, dec_inp, r_emb, r_w_bias, r_bias, dec_attn_mask)
    out = jax.block_until_ready(out)

    ref = reference_forward(params, dec_inp, r_emb, r_w_bias, r_bias,
                            dec_attn_mask, n_head, d_head)
    assert out.shape == (qlen, bsz, d_model)
    # bf16 matmuls (f32 accumulate) + approx reciprocal -> bf16-level tolerance
    assert jnp.allclose(out, ref, atol=2e-2, rtol=2e-2), \
        float(jnp.max(jnp.abs(out - ref)))
    print("KERNEL_OK")
</pallas_src>

<mosaic_0001>
module attributes {stable_mosaic.version = 11 : i64} {
  func.func @kern(%arg0: memref<8x128xf32, #tpu.memory_space<vmem>>, %arg1: memref<8x128xf32, #tpu.memory_space<vmem>>) attributes {dimension_semantics = [], scalar_prefetch = 0 : i64, scratch_operands = 0 : i64, tpu.core_type = #tpu.core_type<tc>} {
    %c0 = arith.constant 0 : index
    %c0_0 = arith.constant 0 : index
    %0 = vector.load %arg0[%c0, %c0_0] : memref<8x128xf32, #tpu.memory_space<vmem>>, vector<8x128xf32>
    %c0_i32 = arith.constant 0 : i32
    %1 = tpu.dynamic_rotate %0 by %c0_i32 dim 1 {stride = 1 : si32, stride_dimension = 0 : si32} : vector<8x128xf32>, i32 -> vector<8x128xf32>
    %c0_1 = arith.constant 0 : index
    %c0_2 = arith.constant 0 : index
    %2 = vector.load %arg1[%c0_1, %c0_2] : memref<8x128xf32, #tpu.memory_space<vmem>>, vector<8x128xf32>
    tpu.vector_store %arg1[%c0_1, %c0_2], %1 {strides = array<i32>} : memref<8x128xf32, #tpu.memory_space<vmem>>, vector<8x128xf32>,
    return
  }
}

module attributes {stable_mosaic.version = 11 : i64} {
  func.func @kern(%arg0: i32, %arg1: memref<8x128xf32, #tpu.memory_space<vmem>>, %arg2: memref<8x128xf32, #tpu.memory_space<vmem>>) attributes {dimension_semantics = [#tpu.dimension_semantics<arbitrary>], iteration_bounds = array<i64: 2>, scalar_prefetch = 0 : i64, scratch_operands = 0 : i64, tpu.core_type = #tpu.core_type<tc>, window_params = [{pipeline_mode = #tpu.pipeline_mode<synchronous>, transform_indices = @transform_0, window_bounds = array<i64: 8, 128>}, {transform_indices = @transform_1, window_bounds = array<i64: 8, 128>}]} {
    %c0 = arith.constant 0 : index
    %c0_0 = arith.constant 0 : index
    %0 = vector.load %arg1[%c0, %c0_0] : memref<8x128xf32, #tpu.memory_space<vmem>>, vector<8x128xf32>
    %cst = arith.constant 2.000000e+00 : f32
    %1 = vector.broadcast %cst : f32 to vector<8x128xf32>
    %2 = arith.mulf %0, %1 : vector<8x128xf32>
    %c0_1 = arith.constant 0 : index
    %c0_2 = arith.constant 0 : index
    %3 = vector.load %arg2[%c0_1, %c0_2] : memref<8x128xf32, #tpu.memory_space<vmem>>, vector<8x128xf32>
    tpu.vector_store %arg2[%c0_1, %c0_2], %2 {strides = array<i32>} : memref<8x128xf32, #tpu.memory_space<vmem>>, vector<8x128xf32>,
    return
  }
  func.func @transform_0(%arg0: i32) -> (i32, i32) {
    %c0_i32 = arith.constant 0 : i32
    %c0_i32_0 = arith.constant 0 : i32
    %c0_i32_1 = arith.constant 0 : i32
    return %c0_i32, %c0_i32_0 : i32, i32
  }
  func.func @transform_1(%arg0: i32) -> (i32, i32) {
    %c0_i32 = arith.constant 0 : i32
    %c0_i32_0 = arith.constant 0 : i32
    return %arg0, %c0_i32 : i32, i32
  }
}

module attributes {stable_mosaic.version = 11 : i64} {
  func.func @_qkv_kernel(%arg0: i32, %arg1: memref<16x16xf32, #tpu.memory_space<vmem>>, %arg2: memref<16x48xbf16, #tpu.memory_space<vmem>>, %arg3: memref<16x48xbf16, #tpu.memory_space<vmem>>) attributes {dimension_semantics = [#tpu.dimension_semantics<parallel>], iteration_bounds = array<i64: 1>, scalar_prefetch = 0 : i64, scratch_operands = 0 : i64, tpu.core_type = #tpu.core_type<tc>, window_params = [{transform_indices = @transform_0, window_bounds = array<i64: 16, 16>}, {pipeline_mode = #tpu.pipeline_mode<synchronous>, transform_indices = @transform_1, window_bounds = array<i64: 16, 48>}, {transform_indices = @transform_2, window_bounds = array<i64: 16, 48>}]} {
    %c0 = arith.constant 0 : index
    %c0_0 = arith.constant 0 : index
    %0 = vector.load %arg1[%c0, %c0_0] : memref<16x16xf32, #tpu.memory_space<vmem>>, vector<16x16xf32>
    %1 = arith.truncf %0 : vector<16x16xf32> to vector<16x16xbf16>
    %c0_1 = arith.constant 0 : index
    %c0_2 = arith.constant 0 : index
    %2 = vector.load %arg2[%c0_1, %c0_2] : memref<16x48xbf16, #tpu.memory_space<vmem>>, vector<16x48xbf16>
    %cst = arith.constant dense<0.000000e+00> : vector<16x48xf32>
    %3 = tpu.matmul %1, %2, %cst {dimension_numbers = #tpu.dot_dimension_numbers<[1], [0], [0], [1], [0, 0, 1, 1], [], []>} : vector<16x16xbf16>, vector<16x48xbf16>, vector<16x48xf32> -> vector<16x48xf32>
    %4 = arith.truncf %3 : vector<16x48xf32> to vector<16x48xbf16>
    %c0_3 = arith.constant 0 : index
    %c0_4 = arith.constant 0 : index
    %5 = vector.load %arg3[%c0_3, %c0_4] : memref<16x48xbf16, #tpu.memory_space<vmem>>, vector<16x48xbf16>
    tpu.vector_store %arg3[%c0_3, %c0_4], %4 {strides = array<i32>} : memref<16x48xbf16, #tpu.memory_space<vmem>>, vector<16x48xbf16>,
    return
  }
  func.func @transform_0(%arg0: i32) -> (i32, i32) {
    %c0_i32 = arith.constant 0 : i32
    %c0_i32_0 = arith.constant 0 : i32
    return %arg0, %c0_i32 : i32, i32
  }
  func.func @transform_1(%arg0: i32) -> (i32, i32) {
    %c0_i32 = arith.constant 0 : i32
    %c0_i32_0 = arith.constant 0 : i32
    %c0_i32_1 = arith.constant 0 : i32
    return %c0_i32, %c0_i32_0 : i32, i32
  }
  func.func @transform_2(%arg0: i32) -> (i32, i32) {
    %c0_i32 = arith.constant 0 : i32
    %c0_i32_0 = arith.constant 0 : i32
    return %arg0, %c0_i32 : i32, i32
  }
}

module attributes {stable_mosaic.version = 11 : i64} {
  func.func @_ff_kernel(%arg0: i32, %arg1: memref<16x16xf32, #tpu.memory_space<vmem>>, %arg2: memref<1x16xf32, #tpu.memory_space<vmem>>, %arg3: memref<1x16xf32, #tpu.memory_space<vmem>>, %arg4: memref<16x32xbf16, #tpu.memory_space<vmem>>, %arg5: memref<1x32xf32, #tpu.memory_space<vmem>>, %arg6: memref<32x16xbf16, #tpu.memory_space<vmem>>, %arg7: memref<1x16xf32, #tpu.memory_space<vmem>>, %arg8: memref<16x16xf32, #tpu.memory_space<vmem>>) attributes {dimension_semantics = [#tpu.dimension_semantics<parallel>], iteration_bounds = array<i64: 1>, scalar_prefetch = 0 : i64, scratch_operands = 0 : i64, tpu.core_type = #tpu.core_type<tc>, window_params = [{transform_indices = @transform_0, window_bounds = array<i64: 16, 16>}, {pipeline_mode = #tpu.pipeline_mode<synchronous>, transform_indices = @transform_1, window_bounds = array<i64: 1, 16>}, {pipeline_mode = #tpu.pipeline_mode<synchronous>, transform_indices = @transform_2, window_bounds = array<i64: 1, 16>}, {pipeline_mode = #tpu.pipeline_mode<synchronous>, transform_indices = @transform_3, window_bounds = array<i64: 16, 32>}, {pipeline_mode = #tpu.pipeline_mode<synchronous>, transform_indices = @transform_4, window_bounds = array<i64: 1, 32>}, {pipeline_mode = #tpu.pipeline_mode<synchronous>, transform_indices = @transform_5, window_bounds = array<i64: 32, 16>}, {pipeline_mode = #tpu.pipeline_mode<synchronous>, transform_indices = @transform_6, window_bounds = array<i64: 1, 16>}, {transform_indices = @transform_7, window_bounds = array<i64: 16, 16>}]} {
    %c0 = arith.constant 0 : index
    %c0_0 = arith.constant 0 : index
    %0 = vector.load %arg1[%c0, %c0_0] : memref<16x16xf32, #tpu.memory_space<vmem>>, vector<16x16xf32>
    %cst = arith.constant dense<0.000000e+00> : vector<16xf32>
    %1 = vector.multi_reduction <add>, %0, %cst [1] : vector<16x16xf32> to vector<16xf32>
    %2 = vector.shape_cast %1 : vector<16xf32> to vector<16x1xf32>
    %cst_1 = arith.constant 1.600000e+01 : f32
    %3 = vector.broadcast %cst_1 : f32 to vector<16x1xf32>
    %4 = arith.divf %2, %3 : vector<16x1xf32>
    %5 = vector.broadcast %4 : vector<16x1xf32> to vector<16x16xf32>
    %6 = arith.subf %0, %5 : vector<16x16xf32>
    %7 = arith.mulf %6, %6 : vector<16x16xf32>
    %cst_2 = arith.constant dense<0.000000e+00> : vector<16xf32>
    %8 = vector.multi_reduction <add>, %7, %cst_2 [1] : vector<16x16xf32> to vector<16xf32>
    %9 = vector.shape_cast %8 : vector<16xf32> to vector<16x1xf32>
    %cst_3 = arith.constant 1.600000e+01 : f32
    %10 = vector.broadcast %cst_3 : f32 to vector<16x1xf32>
    %11 = arith.divf %9, %10 : vector<16x1xf32>
    %12 = vector.broadcast %4 : vector<16x1xf32> to vector<16x16xf32>
    %13 = arith.subf %0, %12 : vector<16x16xf32>
    %cst_4 = arith.constant 9.99999974E-6 : f32
    %14 = vector.broadcast %cst_4 : f32 to vector<16x1xf32>
    %15 = arith.addf %11, %14 : vector<16x1xf32>
    %16 = math.rsqrt %15 : vector<16x1xf32>
    %17 = vector.broadcast %16 : vector<16x1xf32> to vector<16x16xf32>
    %18 = arith.mulf %13, %17 : vector<16x16xf32>
    %c0_5 = arith.constant 0 : index
    %c0_6 = arith.constant 0 : index
    %19 = vector.load %arg2[%c0_5, %c0_6] : memref<1x16xf32, #tpu.memory_space<vmem>>, vector<1x16xf32>
    %20 = vector.broadcast %19 : vector<1x16xf32> to vector<16x16xf32>
    %21 = arith.mulf %18, %20 : vector<16x16xf32>
    %c0_7 = arith.constant 0 : index
    %c0_8 = arith.constant 0 : index
    %22 = vector.load %arg3[%c0_7, %c0_8] : memref<1x16xf32, #tpu.memory_space<vmem>>, vector<1x16xf32>
    %23 = vector.broadcast %22 : vector<1x16xf32> to vector<16x16xf32>
    %24 = arith.addf %21, %23 : vector<16x16xf32>
    %25 = arith.truncf %24 : vector<16x16xf32> to vector<16x16xbf16>
    %c0_9 = arith.constant 0 : index
    %c0_10 = arith.constant 0 : index
    %26 = vector.load %arg4[%c0_9, %c0_10] : memref<16x32xbf16, #tpu.memory_space<vmem>>, vector<16x32xbf16>
    %cst_11 = arith.constant dense<0.000000e+00> : vector<16x32xf32>
    %27 = tpu.matmul %25, %26, %cst_11 {dimension_numbers = #tpu.dot_dimension_numbers<[1], [0], [0], [1], [0, 0, 1, 1], [], []>} : vector<16x16xbf16>, vector<16x32xbf16>, vector<16x32xf32> -> vector<16x32xf32>
    %c0_12 = arith.constant 0 : index
    %c0_13 = arith.constant 0 : index
    %28 = vector.load %arg5[%c0_12, %c0_13] : memref<1x32xf32, #tpu.memory_space<vmem>>, vector<1x32xf32>
    %29 = vector.broadcast %28 : vector<1x32xf32> to vector<16x32xf32>
    %30 = arith.addf %27, %29 : vector<16x32xf32>
    %cst_14 = arith.constant 0.000000e+00 : f32
    %31 = vector.broadcast %cst_14 : f32 to vector<16x32xf32>
    %32 = arith.maximumf %30, %31 : vector<16x32xf32>
    %33 = arith.truncf %32 : vector<16x32xf32> to vector<16x32xbf16>
    %c0_15 = arith.constant 0 : index
    %c0_16 = arith.constant 0 : index
    %34 = vector.load %arg6[%c0_15, %c0_16] : memref<32x16xbf16, #tpu.memory_space<vmem>>, vector<32x16xbf16>
    %cst_17 = arith.constant dense<0.000000e+00> : vector<16x16xf32>
    %35 = tpu.matmul %33, %34, %cst_17 {dimension_numbers = #tpu.dot_dimension_numbers<[1], [0], [0], [1], [0, 0, 1, 1], [], []>} : vector<16x32xbf16>, vector<32x16xbf16>, vector<16x16xf32> -> vector<16x16xf32>
    %c0_18 = arith.constant 0 : index
    %c0_19 = arith.constant 0 : index
    %36 = vector.load %arg7[%c0_18, %c0_19] : memref<1x16xf32, #tpu.memory_space<vmem>>, vector<1x16xf32>
    %37 = vector.broadcast %36 : vector<1x16xf32> to vector<16x16xf32>
    %38 = arith.addf %35, %37 : vector<16x16xf32>
    %c0_20 = arith.constant 0 : index
    %c0_21 = arith.constant 0 : index
    %39 = vector.load %arg8[%c0_20, %c0_21] : memref<16x16xf32, #tpu.memory_space<vmem>>, vector<16x16xf32>
    tpu.vector_store %arg8[%c0_20, %c0_21], %38 {strides = array<i32>} : memref<16x16xf32, #tpu.memory_space<vmem>>, vector<16x16xf32>,
    return
  }
  func.func @transform_0(%arg0: i32) -> (i32, i32) {
    %c0_i32 = arith.constant 0 : i32
    %c0_i32_0 = arith.constant 0 : i32
    return %arg0, %c0_i32 : i32, i32
  }
  func.func @transform_1(%arg0: i32) -> (i32, i32) {
    %c0_i32 = arith.constant 0 : i32
    %c0_i32_0 = arith.constant 0 : i32
    %c0_i32_1 = arith.constant 0 : i32
    return %c0_i32, %c0_i32_0 : i32, i32
  }
  func.func @transform_2(%arg0: i32) -> (i32, i32) {
    %c0_i32 = arith.constant 0 : i32
    %c0_i32_0 = arith.constant 0 : i32
    %c0_i32_1 = arith.constant 0 : i32
    return %c0_i32, %c0_i32_0 : i32, i32
  }
  func.func @transform_3(%arg0: i32) -> (i32, i32) {
    %c0_i32 = arith.constant 0 : i32
    %c0_i32_0 = arith.constant 0 : i32
    %c0_i32_1 = arith.constant 0 : i32
    return %c0_i32, %c0_i32_0 : i32, i32
  }
  func.func @transform_4(%arg0: i32) -> (i32, i32) {
    %c0_i32 = arith.constant 0 : i32
    %c0_i32_0 = arith.constant 0 : i32
    %c0_i32_1 = arith.constant 0 : i32
    return %c0_i32, %c0_i32_0 : i32, i32
  }
  func.func @transform_5(%arg0: i32) -> (i32, i32) {
    %c0_i32 = arith.constant 0 : i32
    %c0_i32_0 = arith.constant 0 : i32
    %c0_i32_1 = arith.constant 0 : i32
    return %c0_i32, %c0_i32_0 : i32, i32
  }
  func.func @transform_6(%arg0: i32) -> (i32, i32) {
    %c0_i32 = arith.constant 0 : i32
    %c0_i32_0 = arith.constant 0 : i32
    %c0_i32_1 = arith.constant 0 : i32
    return %c0_i32, %c0_i32_0 : i32, i32
  }
  func.func @transform_7(%arg0: i32) -> (i32, i32) {
    %c0_i32 = arith.constant 0 : i32
    %c0_i32_0 = arith.constant 0 : i32
    return %arg0, %c0_i32 : i32, i32
  }
}

module attributes {stable_mosaic.version = 11 : i64} {
  func.func @_fused_attn_kernel(%arg0: i32, %arg1: i32, %arg2: memref<1x2x8x8xbf16, #tpu.memory_space<vmem>>, %arg3: memref<1x2x8x8xbf16, #tpu.memory_space<vmem>>, %arg4: memref<1x2x8x8xbf16, #tpu.memory_space<vmem>>, %arg5: memref<1x8x16xf32, #tpu.memory_space<vmem>>, %arg6: memref<2x8x8xbf16, #tpu.memory_space<vmem>>, %arg7: memref<2x8xf32, #tpu.memory_space<vmem>>, %arg8: memref<2x8xf32, #tpu.memory_space<vmem>>, %arg9: memref<8x8xi8, #tpu.memory_space<vmem>>, %arg10: memref<16x16xbf16, #tpu.memory_space<vmem>>, %arg11: memref<1x16xf32, #tpu.memory_space<vmem>>, %arg12: memref<1x16xf32, #tpu.memory_space<vmem>>, %arg13: memref<1x8x16xf32, #tpu.memory_space<vmem>>, %arg14: memref<8x16xbf16, #tpu.memory_space<vmem>>) attributes {dimension_semantics = [#tpu.dimension_semantics<parallel>, #tpu.dimension_semantics<parallel>], iteration_bounds = array<i64: 2, 1>, scalar_prefetch = 0 : i64, scratch_operands = 1 : i64, tpu.core_type = #tpu.core_type<tc>, window_params = [{transform_indices = @transform_0, window_bounds = array<i64: 1, 2, 8, 8>}, {transform_indices = @transform_1, window_bounds = array<i64: 1, 2, 8, 8>}, {transform_indices = @transform_2, window_bounds = array<i64: 1, 2, 8, 8>}, {transform_indices = @transform_3, window_bounds = array<i64: 1, 8, 16>}, {pipeline_mode = #tpu.pipeline_mode<synchronous>, transform_indices = @transform_4, window_bounds = array<i64: 2, 8, 8>}, {pipeline_mode = #tpu.pipeline_mode<synchronous>, transform_indices = @transform_5, window_bounds = array<i64: 2, 8>}, {pipeline_mode = #tpu.pipeline_mode<synchronous>, transform_indices = @transform_6, window_bounds = array<i64: 2, 8>}, {transform_indices = @transform_7, window_bounds = array<i64: 8, 8>}, {pipeline_mode = #tpu.pipeline_mode<synchronous>, transform_indices = @transform_8, window_bounds = array<i64: 16, 16>}, {pipeline_mode = #tpu.pipeline_mode<synchronous>, transform_indices = @transform_9, window_bounds = array<i64: 1, 16>}, {pipeline_mode = #tpu.pipeline_mode<synchronous>, transform_indices = @transform_10, window_bounds = array<i64: 1, 16>}, {transform_indices = @transform_11, window_bounds = array<i64: 1, 8, 16>}]} {
    %c0 = arith.constant 0 : index
    %c0_0 = arith.constant 0 : index
    %0 = vector.load %arg9[%c0, %c0_0] : memref<8x8xi8, #tpu.memory_space<vmem>>, vector<8x8xi8>
    %c0_i8 = arith.constant 0 : i8
    %1 = vector.broadcast %c0_i8 : i8 to vector<8x8xi8>
    %2 = arith.cmpi ne, %0, %1 : vector<8x8xi8>
    %c0_1 = arith.constant 0 : index
    %c0_2 = arith.constant 0 : index
    %c0_3 = arith.constant 0 : index
    %c0_4 = arith.constant 0 : index
    %3 = vector.load %arg2[%c0_1, %c0_2, %c0_3, %c0_4] : memref<1x2x8x8xbf16, #tpu.memory_space<vmem>>, vector<1x1x8x8xbf16>
    %4 = vector.shape_cast %3 : vector<1x1x8x8xbf16> to vector<8x8xbf16>
    %5 = arith.extf %4 : vector<8x8xbf16> to vector<8x8xf32>
    %cst = arith.constant 0.353553385 : f32
    %6 = vector.broadcast %cst : f32 to vector<8x8xf32>
    %7 = arith.mulf %5, %6 : vector<8x8xf32>
    %c0_5 = arith.constant 0 : index
    %c0_6 = arith.constant 0 : index
    %8 = vector.load %arg7[%c0_5, %c0_6] : memref<2x8xf32, #tpu.memory_space<vmem>>, vector<1x8xf32>
    %9 = vector.broadcast %8 : vector<1x8xf32> to vector<8x8xf32>
    %10 = arith.addf %7, %9 : vector<8x8xf32>
    %11 = arith.truncf %10 : vector<8x8xf32> to vector<8x8xbf16>
    %c0_7 = arith.constant 0 : index
    %c0_8 = arith.constant 0 : index
    %c0_9 = arith.constant 0 : index
    %c0_10 = arith.constant 0 : index
    %12 = vector.load %arg3[%c0_7, %c0_8, %c0_9, %c0_10] : memref<1x2x8x8xbf16, #tpu.memory_space<vmem>>, vector<1x1x8x8xbf16>
    %13 = vector.shape_cast %12 : vector<1x1x8x8xbf16> to vector<8x8xbf16>
    %cst_11 = arith.constant dense<0.000000e+00> : vector<8x8xf32>
    %14 = tpu.matmul %11, %13, %cst_11 {dimension_numbers = #tpu.dot_dimension_numbers<[1], [1], [0], [0], [0, 0, 1, 0], [], []>} : vector<8x8xbf16>, vector<8x8xbf16>, vector<8x8xf32> -> vector<8x8xf32>
    %15 = arith.truncf %7 : vector<8x8xf32> to vector<8x8xbf16>
    %c0_12 = arith.constant 0 : index
    %c0_13 = arith.constant 0 : index
    %c0_14 = arith.constant 0 : index
    %16 = vector.load %arg6[%c0_12, %c0_13, %c0_14] : memref<2x8x8xbf16, #tpu.memory_space<vmem>>, vector<1x8x8xbf16>
    %17 = vector.shape_cast %16 : vector<1x8x8xbf16> to vector<8x8xbf16>
    %cst_15 = arith.constant dense<0.000000e+00> : vector<8x8xf32>
    %18 = tpu.matmul %15, %17, %cst_15 {dimension_numbers = #tpu.dot_dimension_numbers<[1], [1], [0], [0], [0, 0, 1, 0], [], []>} : vector<8x8xbf16>, vector<8x8xbf16>, vector<8x8xf32> -> vector<8x8xf32>
    %c0_16 = arith.constant 0 : index
    %c0_17 = arith.constant 0 : index
    %19 = vector.load %arg8[%c0_16, %c0_17] : memref<2x8xf32, #tpu.memory_space<vmem>>, vector<1x8xf32>
    %20 = vector.broadcast %19 : vector<1x8xf32> to vector<8x8xf32>
    %21 = arith.addf %18, %20 : vector<8x8xf32>
    %22 = tpu.iota {dimensions = array<i32: 0>} : vector<8x1xi32>
    %c0_i32 = arith.constant 0 : i32
    %23 = vector.broadcast %c0_i32 : i32 to vector<8x1xi32>
    %24 = arith.shrsi %22, %23 : vector<8x1xi32>
    %c1_i32 = arith.constant 1 : i32
    %25 = vector.broadcast %c1_i32 : i32 to vector<8x1xi32>
    %26 = arith.andi %24, %25 : vector<8x1xi32>
    %c0_i32_18 = arith.constant 0 : i32
    %27 = vector.broadcast %c0_i32_18 : i32 to vector<8x1xi32>
    %28 = arith.cmpi sgt, %26, %27 : vector<8x1xi32>
    %c1_i32_19 = arith.constant 1 : i32
    %29 = tpu.dynamic_rotate %21 by %c1_i32_19 dim 1 : vector<8x8xf32>, i32 -> vector<8x8xf32>
    %30 = vector.shape_cast %28 : vector<8x1xi1> to vector<8x1xi1>
    %31 = vector.broadcast %30 : vector<8x1xi1> to vector<8x8xi1>
    %32 = arith.select %31, %29, %21 : vector<8x8xi1>, vector<8x8xf32>
    %c1_i32_20 = arith.constant 1 : i32
    %33 = vector.broadcast %c1_i32_20 : i32 to vector<8x1xi32>
    %34 = arith.shrsi %22, %33 : vector<8x1xi32>
    %c1_i32_21 = arith.constant 1 : i32
    %35 = vector.broadcast %c1_i32_21 : i32 to vector<8x1xi32>
    %36 = arith.andi %34, %35 : vector<8x1xi32>
    %c0_i32_22 = arith.constant 0 : i32
    %37 = vector.broadcast %c0_i32_22 : i32 to vector<8x1xi32>
    %38 = arith.cmpi sgt, %36, %37 : vector<8x1xi32>
    %c2_i32 = arith.constant 2 : i32
    %39 = tpu.dynamic_rotate %32 by %c2_i32 dim 1 : vector<8x8xf32>, i32 -> vector<8x8xf32>
    %40 = vector.shape_cast %38 : vector<8x1xi1> to vector<8x1xi1>
    %41 = vector.broadcast %40 : vector<8x1xi1> to vector<8x8xi1>
    %42 = arith.select %41, %39, %32 : vector<8x8xi1>, vector<8x8xf32>
    %c2_i32_23 = arith.constant 2 : i32
    %43 = vector.broadcast %c2_i32_23 : i32 to vector<8x1xi32>
    %44 = arith.shrsi %22, %43 : vector<8x1xi32>
    %c1_i32_24 = arith.constant 1 : i32
    %45 = vector.broadcast %c1_i32_24 : i32 to vector<8x1xi32>
    %46 = arith.andi %44, %45 : vector<8x1xi32>
    %c0_i32_25 = arith.constant 0 : i32
    %47 = vector.broadcast %c0_i32_25 : i32 to vector<8x1xi32>
    %48 = arith.cmpi sgt, %46, %47 : vector<8x1xi32>
    %c4_i32 = arith.constant 4 : i32
    %49 = tpu.dynamic_rotate %42 by %c4_i32 dim 1 : vector<8x8xf32>, i32 -> vector<8x8xf32>
    %50 = vector.shape_cast %48 : vector<8x1xi1> to vector<8x1xi1>
    %51 = vector.broadcast %50 : vector<8x1xi1> to vector<8x8xi1>
    %52 = arith.select %51, %49, %42 : vector<8x8xi1>, vector<8x8xf32>
    %c1_i32_26 = arith.constant 1 : i32
    %53 = tpu.dynamic_rotate %52 by %c1_i32_26 dim 1 : vector<8x8xf32>, i32 -> vector<8x8xf32>
    %c7_i32 = arith.constant 7 : i32
    %54 = tpu.dynamic_rotate %53 by %c7_i32 dim 0 : vector<8x8xf32>, i32 -> vector<8x8xf32>
    %55 = tpu.iota {dimensions = array<i32: 1>} : vector<8x8xi32>
    %56 = tpu.iota {dimensions = array<i32: 0>} : vector<8x8xi32>
    %c0_i32_27 = arith.constant 0 : i32
    %57 = vector.broadcast %c0_i32_27 : i32 to vector<8x8xi32>
    %58 = arith.addi %56, %57 : vector<8x8xi32>
    %59 = arith.cmpi sle, %55, %58 : vector<8x8xi32>
    %c1_i32_28 = arith.constant 1 : i32
    %60 = vector.broadcast %c1_i32_28 : i32 to vector<8x8xi32>
    %61 = arith.addi %58, %60 : vector<8x8xi32>
    %62 = arith.cmpi eq, %55, %61 : vector<8x8xi32>
    %cst_29 = arith.constant 0.000000e+00 : f32
    %63 = vector.broadcast %cst_29 : f32 to vector<8x8xf32>
    %64 = arith.select %62, %63, %54 : vector<8x8xi1>, vector<8x8xf32>
    %65 = arith.select %59, %53, %64 : vector<8x8xi1>, vector<8x8xf32>
    %66 = arith.addf %14, %65 : vector<8x8xf32>
    %cst_30 = arith.constant -1.000000e+30 : f32
    %67 = vector.broadcast %cst_30 : f32 to vector<8x8xf32>
    %68 = arith.select %2, %67, %66 : vector<8x8xi1>, vector<8x8xf32>
    %cst_31 = arith.constant dense<0xFF800000> : vector<8xf32>
    %69 = vector.multi_reduction <maximumf>, %68, %cst_31 [1] : vector<8x8xf32> to vector<8xf32>
    %70 = vector.shape_cast %69 : vector<8xf32> to vector<8x1xf32>
    %71 = vector.broadcast %70 : vector<8x1xf32> to vector<8x8xf32>
    %72 = arith.subf %68, %71 : vector<8x8xf32>
    %73 = math.exp %72 : vector<8x8xf32>
    %cst_32 = arith.constant dense<0.000000e+00> : vector<8xf32>
    %74 = vector.multi_reduction <add>, %73, %cst_32 [1] : vector<8x8xf32> to vector<8xf32>
    %75 = vector.shape_cast %74 : vector<8xf32> to vector<8x1xf32>
    %76 = tpu.reciprocal %75 {approx = true} : vector<8x1xf32> -> vector<8x1xf32>
    %77 = vector.broadcast %76 : vector<8x1xf32> to vector<8x8xf32>
    %78 = arith.mulf %73, %77 : vector<8x8xf32>
    %79 = arith.truncf %78 : vector<8x8xf32> to vector<8x8xbf16>
    %c0_33 = arith.constant 0 : index
    %c0_34 = arith.constant 0 : index
    %c0_35 = arith.constant 0 : index
    %c0_36 = arith.constant 0 : index
    %80 = vector.load %arg4[%c0_33, %c0_34, %c0_35, %c0_36] : memref<1x2x8x8xbf16, #tpu.memory_space<vmem>>, vector<1x1x8x8xbf16>
    %81 = vector.shape_cast %80 : vector<1x1x8x8xbf16> to vector<8x8xbf16>
    %cst_37 = arith.constant dense<0.000000e+00> : vector<8x8xf32>
    %82 = tpu.matmul %79, %81, %cst_37 {dimension_numbers = #tpu.dot_dimension_numbers<[1], [0], [0], [1], [0, 0, 1, 1], [], []>} : vector<8x8xbf16>, vector<8x8xbf16>, vector<8x8xf32> -> vector<8x8xf32>
    %83 = arith.truncf %82 : vector<8x8xf32> to vector<8x8xbf16>
    %c0_38 = arith.constant 0 : index
    %c0_39 = arith.constant 0 : index
    %84 = vector.load %arg14[%c0_38, %c0_39] : memref<8x16xbf16, #tpu.memory_space<vmem>>, vector<8x8xbf16>
    tpu.vector_store %arg14[%c0_38, %c0_39], %83 {strides = array<i32>} : memref<8x16xbf16, #tpu.memory_space<vmem>>, vector<8x8xbf16>,
    %c0_40 = arith.constant 0 : index
    %c1 = arith.constant 1 : index
    %c0_41 = arith.constant 0 : index
    %c0_42 = arith.constant 0 : index
    %85 = vector.load %arg2[%c0_40, %c1, %c0_41, %c0_42] : memref<1x2x8x8xbf16, #tpu.memory_space<vmem>>, vector<1x1x8x8xbf16>
    %86 = vector.shape_cast %85 : vector<1x1x8x8xbf16> to vector<8x8xbf16>
    %87 = arith.extf %86 : vector<8x8xbf16> to vector<8x8xf32>
    %cst_43 = arith.constant 0.353553385 : f32
    %88 = vector.broadcast %cst_43 : f32 to vector<8x8xf32>
    %89 = arith.mulf %87, %88 : vector<8x8xf32>
    %c1_44 = arith.constant 1 : index
    %c0_45 = arith.constant 0 : index
    %90 = vector.load %arg7[%c1_44, %c0_45] : memref<2x8xf32, #tpu.memory_space<vmem>>, vector<1x8xf32>
    %91 = vector.broadcast %90 : vector<1x8xf32> to vector<8x8xf32>
    %92 = arith.addf %89, %91 : vector<8x8xf32>
    %93 = arith.truncf %92 : vector<8x8xf32> to vector<8x8xbf16>
    %c0_46 = arith.constant 0 : index
    %c1_47 = arith.constant 1 : index
    %c0_48 = arith.constant 0 : index
    %c0_49 = arith.constant 0 : index
    %94 = vector.load %arg3[%c0_46, %c1_47, %c0_48, %c0_49] : memref<1x2x8x8xbf16, #tpu.memory_space<vmem>>, vector<1x1x8x8xbf16>
    %95 = vector.shape_cast %94 : vector<1x1x8x8xbf16> to vector<8x8xbf16>
    %cst_50 = arith.constant dense<0.000000e+00> : vector<8x8xf32>
    %96 = tpu.matmul %93, %95, %cst_50 {dimension_numbers = #tpu.dot_dimension_numbers<[1], [1], [0], [0], [0, 0, 1, 0], [], []>} : vector<8x8xbf16>, vector<8x8xbf16>, vector<8x8xf32> -> vector<8x8xf32>
    %97 = arith.truncf %89 : vector<8x8xf32> to vector<8x8xbf16>
    %c1_51 = arith.constant 1 : index
    %c0_52 = arith.constant 0 : index
    %c0_53 = arith.constant 0 : index
    %98 = vector.load %arg6[%c1_51, %c0_52, %c0_53] : memref<2x8x8xbf16, #tpu.memory_space<vmem>>, vector<1x8x8xbf16>
    %99 = vector.shape_cast %98 : vector<1x8x8xbf16> to vector<8x8xbf16>
    %cst_54 = arith.constant dense<0.000000e+00> : vector<8x8xf32>
    %100 = tpu.matmul %97, %99, %cst_54 {dimension_numbers = #tpu.dot_dimension_numbers<[1], [1], [0], [0], [0, 0, 1, 0], [], []>} : vector<8x8xbf16>, vector<8x8xbf16>, vector<8x8xf32> -> vector<8x8xf32>
    %c1_55 = arith.constant 1 : index
    %c0_56 = arith.constant 0 : index
    %101 = vector.load %arg8[%c1_55, %c0_56] : memref<2x8xf32, #tpu.memory_space<vmem>>, vector<1x8xf32>
    %102 = vector.broadcast %101 : vector<1x8xf32> to vector<8x8xf32>
    %103 = arith.addf %100, %102 : vector<8x8xf32>
    %104 = tpu.iota {dimensions = array<i32: 0>} : vector<8x1xi32>
    %c0_i32_57 = arith.constant 0 : i32
    %105 = vector.broadcast %c0_i32_57 : i32 to vector<8x1xi32>
    %106 = arith.shrsi %104, %105 : vector<8x1xi32>
    %c1_i32_58 = arith.constant 1 : i32
    %107 = vector.broadcast %c1_i32_58 : i32 to vector<8x1xi32>
    %108 = arith.andi %106, %107 : vector<8x1xi32>
    %c0_i32_59 = arith.constant 0 : i32
    %109 = vector.broadcast %c0_i32_59 : i32 to vector<8x1xi32>
    %110 = arith.cmpi sgt, %108, %109 : vector<8x1xi32>
    %c1_i32_60 = arith.constant 1 : i32
    %111 = tpu.dynamic_rotate %103 by %c1_i32_60 dim 1 : vector<8x8xf32>, i32 -> vector<8x8xf32>
    %112 = vector.shape_cast %110 : vector<8x1xi1> to vector<8x1xi1>
    %113 = vector.broadcast %112 : vector<8x1xi1> to vector<8x8xi1>
    %114 = arith.select %113, %111, %103 : vector<8x8xi1>, vector<8x8xf32>
    %c1_i32_61 = arith.constant 1 : i32
    %115 = vector.broadcast %c1_i32_61 : i32 to vector<8x1xi32>
    %116 = arith.shrsi %104, %115 : vector<8x1xi32>
    %c1_i32_62 = arith.constant 1 : i32
    %117 = vector.broadcast %c1_i32_62 : i32 to vector<8x1xi32>
    %118 = arith.andi %116, %117 : vector<8x1xi32>
    %c0_i32_63 = arith.constant 0 : i32
    %119 = vector.broadcast %c0_i32_63 : i32 to vector<8x1xi32>
    %120 = arith.cmpi sgt, %118, %119 : vector<8x1xi32>
    %c2_i32_64 = arith.constant 2 : i32
    %121 = tpu.dynamic_rotate %114 by %c2_i32_64 dim 1 : vector<8x8xf32>, i32 -> vector<8x8xf32>
    %122 = vector.shape_cast %120 : vector<8x1xi1> to vector<8x1xi1>
    %123 = vector.broadcast %122 : vector<8x1xi1> to vector<8x8xi1>
    %124 = arith.select %123, %121, %114 : vector<8x8xi1>, vector<8x8xf32>
    %c2_i32_65 = arith.constant 2 : i32
    %125 = vector.broadcast %c2_i32_65 : i32 to vector<8x1xi32>
    %126 = arith.shrsi %104, %125 : vector<8x1xi32>
    %c1_i32_66 = arith.constant 1 : i32
    %127 = vector.broadcast %c1_i32_66 : i32 to vector<8x1xi32>
    %128 = arith.andi %126, %127 : vector<8x1xi32>
    %c0_i32_67 = arith.constant 0 : i32
    %129 = vector.broadcast %c0_i32_67 : i32 to vector<8x1xi32>
    %130 = arith.cmpi sgt, %128, %129 : vector<8x1xi32>
    %c4_i32_68 = arith.constant 4 : i32
    %131 = tpu.dynamic_rotate %124 by %c4_i32_68 dim 1 : vector<8x8xf32>, i32 -> vector<8x8xf32>
    %132 = vector.shape_cast %130 : vector<8x1xi1> to vector<8x1xi1>
    %133 = vector.broadcast %132 : vector<8x1xi1> to vector<8x8xi1>
    %134 = arith.select %133, %131, %124 : vector<8x8xi1>, vector<8x8xf32>
    %c1_i32_69 = arith.constant 1 : i32
    %135 = tpu.dynamic_rotate %134 by %c1_i32_69 dim 1 : vector<8x8xf32>, i32 -> vector<8x8xf32>
    %c7_i32_70 = arith.constant 7 : i32
    %136 = tpu.dynamic_rotate %135 by %c7_i32_70 dim 0 : vector<8x8xf32>, i32 -> vector<8x8xf32>
    %137 = tpu.iota {dimensions = array<i32: 1>} : vector<8x8xi32>
    %138 = tpu.iota {dimensions = array<i32: 0>} : vector<8x8xi32>
    %c0_i32_71 = arith.constant 0 : i32
    %139 = vector.broadcast %c0_i32_71 : i32 to vector<8x8xi32>
    %140 = arith.addi %138, %139 : vector<8x8xi32>
    %141 = arith.cmpi sle, %137, %140 : vector<8x8xi32>
    %c1_i32_72 = arith.constant 1 : i32
    %142 = vector.broadcast %c1_i32_72 : i32 to vector<8x8xi32>
    %143 = arith.addi %140, %142 : vector<8x8xi32>
    %144 = arith.cmpi eq, %137, %143 : vector<8x8xi32>
    %cst_73 = arith.constant 0.000000e+00 : f32
    %145 = vector.broadcast %cst_73 : f32 to vector<8x8xf32>
    %146 = arith.select %144, %145, %136 : vector<8x8xi1>, vector<8x8xf32>
    %147 = arith.select %141, %135, %146 : vector<8x8xi1>, vector<8x8xf32>
    %148 = arith.addf %96, %147 : vector<8x8xf32>
    %cst_74 = arith.constant -1.000000e+30 : f32
    %149 = vector.broadcast %cst_74 : f32 to vector<8x8xf32>
    %150 = arith.select %2, %149, %148 : vector<8x8xi1>, vector<8x8xf32>
    %cst_75 = arith.constant dense<0xFF800000> : vector<8xf32>
    %151 = vector.multi_reduction <maximumf>, %150, %cst_75 [1] : vector<8x8xf32> to vector<8xf32>
    %152 = vector.shape_cast %151 : vector<8xf32> to vector<8x1xf32>
    %153 = vector.broadcast %152 : vector<8x1xf32> to vector<8x8xf32>
    %154 = arith.subf %150, %153 : vector<8x8xf32>
    %155 = math.exp %154 : vector<8x8xf32>
    %cst_76 = arith.constant dense<0.000000e+00> : vector<8xf32>
    %156 = vector.multi_reduction <add>, %155, %cst_76 [1] : vector<8x8xf32> to vector<8xf32>
    %157 = vector.shape_cast %156 : vector<8xf32> to vector<8x1xf32>
    %158 = tpu.reciprocal %157 {approx = true} : vector<8x1xf32> -> vector<8x1xf32>
    %159 = vector.broadcast %158 : vector<8x1xf32> to vector<8x8xf32>
    %160 = arith.mulf %155, %159 : vector<8x8xf32>
    %161 = arith.truncf %160 : vector<8x8xf32> to vector<8x8xbf16>
    %c0_77 = arith.constant 0 : index
    %c1_78 = arith.constant 1 : index
    %c0_79 = arith.constant 0 : index
    %c0_80 = arith.constant 0 : index
    %162 = vector.load %arg4[%c0_77, %c1_78, %c0_79, %c0_80] : memref<1x2x8x8xbf16, #tpu.memory_space<vmem>>, vector<1x1x8x8xbf16>
    %163 = vector.shape_cast %162 : vector<1x1x8x8xbf16> to vector<8x8xbf16>
    %cst_81 = arith.constant dense<0.000000e+00> : vector<8x8xf32>
    %164 = tpu.matmul %161, %163, %cst_81 {dimension_numbers = #tpu.dot_dimension_numbers<[1], [0], [0], [1], [0, 0, 1, 1], [], []>} : vector<8x8xbf16>, vector<8x8xbf16>, vector<8x8xf32> -> vector<8x8xf32>
    %165 = arith.truncf %164 : vector<8x8xf32> to vector<8x8xbf16>
    %c0_82 = arith.constant 0 : index
    %c8 = arith.constant 8 : index
    %166 = vector.load %arg14[%c0_82, %c8] : memref<8x16xbf16, #tpu.memory_space<vmem>>, vector<8x8xbf16>
    tpu.vector_store %arg14[%c0_82, %c8], %165 {strides = array<i32>} : memref<8x16xbf16, #tpu.memory_space<vmem>>, vector<8x8xbf16>,
    %c0_83 = arith.constant 0 : index
    %c0_84 = arith.constant 0 : index
    %167 = vector.load %arg14[%c0_83, %c0_84] : memref<8x16xbf16, #tpu.memory_space<vmem>>, vector<8x16xbf16>
    %c0_85 = arith.constant 0 : index
    %c0_86 = arith.constant 0 : index
    %168 = vector.load %arg10[%c0_85, %c0_86] : memref<16x16xbf16, #tpu.memory_space<vmem>>, vector<16x16xbf16>
    %cst_87 = arith.constant dense<0.000000e+00> : vector<8x16xf32>
    %169 = tpu.matmul %167, %168, %cst_87 {dimension_numbers = #tpu.dot_dimension_numbers<[1], [0], [0], [1], [0, 0, 1, 1], [], []>} : vector<8x16xbf16>, vector<16x16xbf16>, vector<8x16xf32> -> vector<8x16xf32>
    %c0_88 = arith.constant 0 : index
    %c0_89 = arith.constant 0 : index
    %c0_90 = arith.constant 0 : index
    %170 = vector.load %arg5[%c0_88, %c0_89, %c0_90] : memref<1x8x16xf32, #tpu.memory_space<vmem>>, vector<1x8x16xf32>
    %171 = vector.shape_cast %170 : vector<1x8x16xf32> to vector<8x16xf32>
    %172 = arith.addf %171, %169 : vector<8x16xf32>
    %cst_91 = arith.constant dense<0.000000e+00> : vector<8xf32>
    %173 = vector.multi_reduction <add>, %172, %cst_91 [1] : vector<8x16xf32> to vector<8xf32>
    %174 = vector.shape_cast %173 : vector<8xf32> to vector<8x1xf32>
    %cst_92 = arith.constant 1.600000e+01 : f32
    %175 = vector.broadcast %cst_92 : f32 to vector<8x1xf32>
    %176 = arith.divf %174, %175 : vector<8x1xf32>
    %177 = vector.broadcast %176 : vector<8x1xf32> to vector<8x16xf32>
    %178 = arith.subf %172, %177 : vector<8x16xf32>
    %179 = arith.mulf %178, %178 : vector<8x16xf32>
    %cst_93 = arith.constant dense<0.000000e+00> : vector<8xf32>
    %180 = vector.multi_reduction <add>, %179, %cst_93 [1] : vector<8x16xf32> to vector<8xf32>
    %181 = vector.shape_cast %180 : vector<8xf32> to vector<8x1xf32>
    %cst_94 = arith.constant 1.600000e+01 : f32
    %182 = vector.broadcast %cst_94 : f32 to vector<8x1xf32>
    %183 = arith.divf %181, %182 : vector<8x1xf32>
    %184 = vector.broadcast %176 : vector<8x1xf32> to vector<8x16xf32>
    %185 = arith.subf %172, %184 : vector<8x16xf32>
    %cst_95 = arith.constant 9.99999974E-6 : f32
    %186 = vector.broadcast %cst_95 : f32 to vector<8x1xf32>
    %187 = arith.addf %183, %186 : vector<8x1xf32>
    %188 = math.rsqrt %187 : vector<8x1xf32>
    %189 = vector.broadcast %188 : vector<8x1xf32> to vector<8x16xf32>
    %190 = arith.mulf %185, %189 : vector<8x16xf32>
    %c0_96 = arith.constant 0 : index
    %c0_97 = arith.constant 0 : index
    %191 = vector.load %arg11[%c0_96, %c0_97] : memref<1x16xf32, #tpu.memory_space<vmem>>, vector<1x16xf32>
    %192 = vector.broadcast %191 : vector<1x16xf32> to vector<8x16xf32>
    %193 = arith.mulf %190, %192 : vector<8x16xf32>
    %c0_98 = arith.constant 0 : index
    %c0_99 = arith.constant 0 : index
    %194 = vector.load %arg12[%c0_98, %c0_99] : memref<1x16xf32, #tpu.memory_space<vmem>>, vector<1x16xf32>
    %195 = vector.broadcast %194 : vector<1x16xf32> to vector<8x16xf32>
    %196 = arith.addf %193, %195 : vector<8x16xf32>
    %c0_100 = arith.constant 0 : index
    %c0_101 = arith.constant 0 : index
    %c0_102 = arith.constant 0 : index
    %197 = vector.load %arg13[%c0_100, %c0_101, %c0_102] : memref<1x8x16xf32, #tpu.memory_space<vmem>>, vector<1x8x16xf32>
    %198 = vector.shape_cast %197 : vector<1x8x16xf32> to vector<8x16xf32>
    %199 = vector.shape_cast %196 : vector<8x16xf32> to vector<1x8x16xf32>
    tpu.vector_store %arg13[%c0_100, %c0_101, %c0_102], %199 {strides = array<i32>} : memref<1x8x16xf32, #tpu.memory_space<vmem>>, vector<1x8x16xf32>,
    return
  }
  func.func @transform_0(%arg0: i32, %arg1: i32) -> (i32, i32, i32, i32) {
    %c0_i32 = arith.constant 0 : i32
    %c0_i32_0 = arith.constant 0 : i32
    %c0_i32_1 = arith.constant 0 : i32
    return %arg0, %c0_i32, %arg1, %c0_i32_0 : i32, i32, i32, i32
  }
  func.func @transform_1(%arg0: i32, %arg1: i32) -> (i32, i32, i32, i32) {
    %c0_i32 = arith.constant 0 : i32
    %c0_i32_0 = arith.constant 0 : i32
    %c0_i32_1 = arith.constant 0 : i32
    %c0_i32_2 = arith.constant 0 : i32
    return %arg0, %c0_i32, %c0_i32_0, %c0_i32_1 : i32, i32, i32, i32
  }
  func.func @transform_2(%arg0: i32, %arg1: i32) -> (i32, i32, i32, i32) {
    %c0_i32 = arith.constant 0 : i32
    %c0_i32_0 = arith.constant 0 : i32
    %c0_i32_1 = arith.constant 0 : i32
    %c0_i32_2 = arith.constant 0 : i32
    return %arg0, %c0_i32, %c0_i32_0, %c0_i32_1 : i32, i32, i32, i32
  }
  func.func @transform_3(%arg0: i32, %arg1: i32) -> (i32, i32, i32) {
    %c0_i32 = arith.constant 0 : i32
    %c0_i32_0 = arith.constant 0 : i32
    return %arg0, %arg1, %c0_i32 : i32, i32, i32
  }
  func.func @transform_4(%arg0: i32, %arg1: i32) -> (i32, i32, i32) {
    %c0_i32 = arith.constant 0 : i32
    %c0_i32_0 = arith.constant 0 : i32
    %c0_i32_1 = arith.constant 0 : i32
    %c0_i32_2 = arith.constant 0 : i32
    return %c0_i32, %c0_i32_0, %c0_i32_1 : i32, i32, i32
  }
  func.func @transform_5(%arg0: i32, %arg1: i32) -> (i32, i32) {
    %c0_i32 = arith.constant 0 : i32
    %c0_i32_0 = arith.constant 0 : i32
    %c0_i32_1 = arith.constant 0 : i32
    return %c0_i32, %c0_i32_0 : i32, i32
  }
  func.func @transform_6(%arg0: i32, %arg1: i32) -> (i32, i32) {
    %c0_i32 = arith.constant 0 : i32
    %c0_i32_0 = arith.constant 0 : i32
    %c0_i32_1 = arith.constant 0 : i32
    return %c0_i32, %c0_i32_0 : i32, i32
  }
  func.func @transform_7(%arg0: i32, %arg1: i32) -> (i32, i32) {
    %c0_i32 = arith.constant 0 : i32
    %c0_i32_0 = arith.constant 0 : i32
    return %arg1, %c0_i32 : i32, i32
  }
  func.func @transform_8(%arg0: i32, %arg1: i32) -> (i32, i32) {
    %c0_i32 = arith.constant 0 : i32
    %c0_i32_0 = arith.constant 0 : i32
    %c0_i32_1 = arith.constant 0 : i32
    return %c0_i32, %c0_i32_0 : i32, i32
  }
  func.func @transform_9(%arg0: i32, %arg1: i32) -> (i32, i32) {
    %c0_i32 = arith.constant 0 : i32
    %c0_i32_0 = arith.constant 0 : i32
    %c0_i32_1 = arith.constant 0 : i32
    return %c0_i32, %c0_i32_0 : i32, i32
  }
  func.func @transform_10(%arg0: i32, %arg1: i32) -> (i32, i32) {
    %c0_i32 = arith.constant 0 : i32
    %c0_i32_0 = arith.constant 0 : i32
    %c0_i32_1 = arith.constant 0 : i32
    return %c0_i32, %c0_i32_0 : i32, i32
  }
  func.func @transform_11(%arg0: i32, %arg1: i32) -> (i32, i32, i32) {
    %c0_i32 = arith.constant 0 : i32
    %c0_i32_0 = arith.constant 0 : i32
    return %arg0, %arg1, %c0_i32 : i32, i32, i32
  }
}

</mosaic_0001>

<bundles_post_ra>
// kernel: tpu_custom_call.1
= control target key start
LH: loop header
LB: loop body
LE: loop exit
PB: predicated region body
PF: predicated region fallthrough
CT: control target
= control target key end

     0   :  { %6 = vsyncpa [#allocation3], 0  ;;  %s129_s0 = inlined_call_operand.hbm [shape: f32[8,128], index: 0, kind: input, shape index: {}]   ;;  %s130_s1 = inlined_call_operand.hbm [shape: f32[8,128], index: 1, kind: output, shape index: {}]  }
   0x1   :  { %7 = vsyncpa [#allocation4], 0  ;;  %s92_s6 = smov [#allocation2]   ;;  %s44_s10 = scalar_lea.hbm %s129_s0, 128 }
   0x2   :  { %s14_s7 = sshll.u32 %s92_s6, 4  ;;  %p45_p0 = scmp.ne.s32.totalorder %s129_s0, %s44_s10  ;;  %s15_s7 = int_to_ptr.vmem [resolvable:$true] %s14_s7 }
   0x3   :  { %p48_p1 = scmp.lt.u32.totalorder %s44_s10, %s129_s0 }
   0x5   :  { %p50_p2 = pnand %p48_p1, %p45_p0 }
   0x7   :  { %53 = shalt.err (!%p50_p2)
}
   0x8   :  { %s54_s15 = scalar_lea.vmem %s15_s7, 128  ;;  %p59_p4 = scmp.lt.s32.totalorder %s15_s7, %s15_s7 }
   0x9   :  { %p55_p3 = scmp.ne.s32.totalorder %s15_s7, %s54_s15  ;;  %p60_p5 = scmp.lt.s32.totalorder %s54_s15, %s54_s15 }
   0xb   :  { %p61_p6 = por %p60_p5, %p59_p4 }
   0xd   :  { %p62_p7 = pnand %p61_p6, %p55_p3 }
   0xf   :  { %65 = shalt.err (!%p62_p7)
}
  0x10   :  { %17 = dma.hbm_to_vmem [thread:$0]  %s129_s0, 128, %s15_s7, [#allocation3]  }
  0x11   :  { %88 = dma.done.wait [#allocation3], 128  }
  0x12   :  { %89 = vsyncadd [#allocation3], 4294967168  ;;  %v21_v0 = vld [vmem:[#allocation2] sm:$0xff]  ;;  %s93_s18 = smov 256   ;;  %s94_s19 = smov [#allocation5]  }
  0x13   :  { %23 = vrot.lane.b32.xlu0 %v21_v0, %s93_s18  ;;  %s32_s20 = sshll.u32 %s94_s19, 4  ;;  %s33_s20 = int_to_ptr.vmem [resolvable:$true] %s32_s20 }
  0x14   :  { %s66_s21 = scalar_lea.vmem %s33_s20, 128  ;;  %p71_p9 = scmp.lt.s32.totalorder %s33_s20, %s33_s20 }
  0x15   :  { %p67_p8 = scmp.ne.s32.totalorder %s33_s20, %s66_s21  ;;  %p72_p10 = scmp.lt.s32.totalorder %s66_s21, %s66_s21 }
  0x17   :  { %p73_p11 = por %p72_p10, %p71_p9 }
  0x19   :  { %p74_p12 = pnand %p73_p11, %p67_p8 }
  0x85   :  { %v24_v1 = vpop.permute.xlu0 %23 }
  0x86   :  { %25 = vst [vmem:[#allocation5] sm:$0xff] %v24_v1 }
  0x87   :  { %77 = shalt.err (!%p74_p12)
}
  0x88   :  { %s78_s0 = scalar_lea.hbm %s130_s1, 128 }
  0x89   :  { %p79_p13 = scmp.ne.s32.totalorder %s130_s1, %s78_s0  ;;  %p82_p0 = scmp.lt.u32.totalorder %s78_s0, %s130_s1 }
  0x8b   :  { %p84_p1 = pnand %p82_p0, %p79_p13 }
  0x8d   :  { %87 = shalt.err (!%p84_p1)
}
  0x8e   :  { %35 = dma.vmem_to_hbm [thread:$0]  %s33_s20, 128, %s130_s1, [#allocation4]  }
  0x8f   :  { %90 = dma.done.wait [#allocation4], 128  }
  0x90   :  { %91 = vsyncadd [#allocation4], 4294967168 }
  0x91   :  { %39 = vsyncpa [#allocation3], 1 }
  0x92   :  { %40 = vsyncpa [#allocation4], 1 }

// kernel: tpu_custom_call.1
= control target key start
LH: loop header
LB: loop body
LE: loop exit
PB: predicated region body
PF: predicated region fallthrough
CT: control target
= control target key end

     0   :  { %6 = vsyncpa [#allocation3], 0  ;;  %s482_s0 = inlined_call_operand.hbm [shape: f32[8,128], index: 0, kind: input, shape index: {}]   ;;  %s483_s1 = inlined_call_operand.hbm [shape: f32[16,128], index: 1, kind: output, shape index: {}]  }
   0x1   :  { %7 = vsyncpa [#allocation4], 0 }
   0x2   :  { %9 = vsyncpa [#allocation4 + $0x1], 0  ;;  %s352_s6 = smov 0   ;;  %s354_s7 = smov 0  }
   0x3   :  { %s356_s8 = smov 0   ;;  %s358_s9 = smov 0  }
   0x4 LB: > { %s373_s10 = sadd.s32 4294967295, %s338_s9   ;;  %s184_s11 = sadd.s32 4294967294, %s338_s9   ;;  %s338_s9 = sphi %s358_s9, %s499_s9   ;;  %s334_s8 = sphi %s356_s8, %s498_s8   ;;  %s330_s7 = sphi %s354_s7, %s497_s7   ;;  %s326_s6 = sphi %s352_s6, %s496_s6  }
   0x5   : > { %s377_s12 = sadd.s32 1, %s338_s9   ;;  %s43_s13 = sadd.s32 1, %s334_s8 }
   0x6   : > { %s40_s14 = ssub.s32 %s338_s9, %s377_s12  ;;  %p53_p0 = scmp.ne.s32.totalorder %s334_s8, %s330_s7 }
   0x7   : > { %p41_p1 = scmp.eq.s32.totalorder %s40_s14, 0  ;;  %p54_p2 = scmp.eq.s32.totalorder %s373_s10, 1 }
   0x8   : > { %p59_p3 = scmp.ne.s32.totalorder %s330_s7, %s326_s6  ;;  %p60_p4 = scmp.eq.s32.totalorder %s184_s11, 1 }
   0x9   : > { %s388_s15 = scalar_select %p41_p1, %s334_s8, %s43_s13  }
   0xa   : > { %p390_p5 = por %p54_p2, %p53_p0  ;;  %p394_p6 = por %p60_p4, %p59_p3 }
   0xb   : > { %p185_p7 = scmp.ge.s32.totalorder %s338_s9, 1  ;;  %p67_p8 = scmp.lt.s32.totalorder %s338_s9, 3 }
   0xc   : > { %s487_s16 = scalar_select %p390_p5, 1, 0 }
   0xd   : > { %s488_s17 = scalar_select %p394_p6, 1, 0 }
   0xe   : > { %p484_p9 = scmp.eq.s32.totalorder %s373_s10, 0  ;;  %p401_p10 = pnand %p185_p7, %p67_p8 }
   0xf   : > { %s340_s19 = smov [#allocation2]   ;;  %s244_s24 = scalar_lea.hbm %s482_s0, 128 }
  0x10   : > { %s489_s18 = scalar_select %p401_p10, 1, 0 }
  0x11   : > { %s80_s20 = sshll.u32 %s340_s19, 4  ;;  %p200_p11 = pneg %p401_p10  ;;  %s81_s20 = int_to_ptr.vmem [resolvable:$true] %s80_s20 }
  0x12   : > { %p245_p13 = scmp.ne.s32.totalorder %s482_s0, %s244_s24  ;;  %p251_p3 = scmp.lt.u32.totalorder %s244_s24, %s482_s0 }
  0x13   : > { %p409_p12 = pnand %p484_p9, %p200_p11 }
  0x15   : > { %p246_p0 = pneg %p409_p12 }
  0x17   : > { %p247_p1 = pnand %p246_p0, %p245_p13 }
  0x19   : > { %p248_p2 = pneg %p247_p1 }
  0x1b   : > { %p253_p4 = pnand %p251_p3, %p248_p2 }
  0x1d   : > { %256 = shalt.err (!%p253_p4)
}
  0x1e   : > { %s257_s29 = scalar_lea.vmem %s81_s20, 128  ;;  %p265_p9 = scmp.lt.s32.totalorder %s81_s20, %s81_s20 }
  0x1f   : > { %p258_p7 = scmp.ne.s32.totalorder %s81_s20, %s257_s29  ;;  %p266_p6 = scmp.lt.s32.totalorder %s257_s29, %s257_s29 }
  0x21   : > { %p260_p8 = pnand %p258_p7, %p246_p0  ;;  %p267_p5 = por %p266_p6, %p265_p9 }
  0x23   : > { %p261_p11 = pneg %p260_p8 }
  0x25   : > { %p268_p10 = pnand %p267_p5, %p261_p11 }
  0x27   : > { %271 = shalt.err (!%p268_p10)
}
  0x28   : > { %203 = dma.hbm_to_vmem [thread:$0]  (!%p409_p12), %s482_s0, 128, %s81_s20, [#allocation3]  }
  0x29   : > { %p491_p13 = scmp.ne.s32.totalorder %s489_s18, 0 }
  0x2a   : > { %p492_p1 = scmp.eq.s32.totalorder (!%p491_p13), %s373_s10, 0 }
  0x2b   : > { %93 = sbr.rel (%p491_p13) target bundleno = 77 (0x4d), region = 24 }
  0x32   : > { %317 = dma.done.wait (%p492_p1), [#allocation3], 128   ;;  %p493_p0 = pmov %p492_p1 }
  0x33   : > { %s105_s3 = sand.u32 1, %s330_s7   ;;  %s191_s13 = sshll.u32 %s373_s10, 7  ;;  %v108_v0 = vld [vmem:[#allocation2] sm:$0xff] }
  0x34   : > { %319 = vsyncadd (%p493_p0), [#allocation3], 4294967168  ;;  %s189_s4 = sshll.u32 %s105_s3, 3  ;;  %v109_v1 = vmul.f32 2.0, %v108_v0  ;;  %s442_s19 = scalar_lea.hbm %s483_s1, %s191_s13 }
  0x35   : > { %s107_s5 = scalar_lea.vmem [#allocation5], %s189_s4  ;;  %s112_s20 = scalar_lea.sflag [#allocation4], %s105_s3 }
  0x36   : > { %s125_s11 = sshll.u32 %s107_s5, 4  ;;  %110 = vst [vmem:[%s107_s5] sm:$0xff] %v109_v1  ;;  %p494_p6 = scmp.ne.s32.totalorder %s487_s16, 0  ;;  %s437_s11 = int_to_ptr.vmem [resolvable:$true] %s125_s11 }
  0x37   : > { %s272_s21 = scalar_lea.vmem %s437_s11, 128  ;;  %s341_s10 = smov [#allocation5]  }
  0x38   : > { %p273_p5 = scmp.ne.s32.totalorder %s437_s11, %s272_s21  ;;  %s276_s22 = sshll.u32 %s341_s10, 4  ;;  %s277_s22 = int_to_ptr.vmem [resolvable:$false] %s276_s22 }
  0x39   : > { %s278_s23 = scalar_lea.vmem %s277_s22, 256  ;;  %p279_p12 = scmp.lt.s32.totalorder %s437_s11, %s277_s22 }
  0x3a   : > { %p274_p9 = pnand %p273_p5, %p494_p6  ;;  %p280_p2 = scmp.lt.s32.totalorder %s278_s23, %s272_s21 }
  0x3c   : > { %p275_p10 = pneg %p274_p9  ;;  %p281_p3 = por %p280_p2, %p279_p12 }
  0x3e   : > { %p282_p4 = pnand %p281_p3, %p275_p10 }
  0x40   : > { %285 = shalt.err (!%p282_p4)
}
  0x41   : > { %s286_s24 = scalar_lea.hbm %s442_s19, 128  ;;  %s290_s27 = scalar_lea.hbm %s483_s1, 256 }
  0x42   : > { %p287_p7 = scmp.ne.s32.totalorder %s442_s19, %s286_s24  ;;  %p291_p13 = scmp.lt.u32.totalorder %s442_s19, %s483_s1 }
  0x43   : > { %p292_p1 = scmp.lt.u32.totalorder %s290_s27, %s286_s24  ;;  %p294_p5 = scmp.lt.u32.totalorder %s286_s24, %s442_s19 }
  0x44   : > { %p288_p8 = pnand %p287_p7, %p494_p6 }
  0x45   : > { %p293_p0 = por %p292_p1, %p291_p13 }
  0x46   : > { %p289_p11 = pneg %p288_p8 }
  0x47   : > { %p295_p9 = por %p294_p5, %p293_p0 }
  0x49   : > { %p296_p10 = pnand %p295_p9, %p289_p11 }
  0x4b   : > { %299 = shalt.err (!%p296_p10)
}
  0x4c   : > { %198 = dma.vmem_to_hbm [thread:$0]  (%p494_p6), %s437_s11, 128, %s442_s19, %s112_s20  }
  0x4d PF: > { %p210_p12 = scmp.ge.s32.totalorder %s338_s9, 2  ;;  %s137_s30 = sand.u32 1, %s326_s6  }
  0x4e   : > { %p495_p2 = scmp.ne.s32.totalorder %s488_s17, 0  ;;  %s138_s2 = scalar_lea.sflag [#allocation4], %s137_s30 }
  0x50   : > { %p205_p3 = pnand %p210_p12, %p495_p2 }
  0x52   : > { %321 = dma.done.wait (!%p205_p3), %s138_s2, 128  }
  0x53   : > { %323 = vsyncadd (!%p205_p3), %s138_s2, 4294967168  ;;  %p12_p4 = scmp.ge.s32.totalorder %s377_s12, 4   ;;  %s496_s6 = smov %s330_s7 }
  0x54   : > { %s497_s7 = smov %s334_s8  ;;  %s498_s8 = smov %s388_s15 }
  0x55   : > { %s499_s9 = smov %s377_s12  ;;  %14 = sbr.rel (!%p12_p4) target bundleno = 4 (0x4), region = 61 }
  0x5c   :  { %143 = vsyncpa [#allocation3], 1 }
  0x5d   :  { %145 = vsyncpa [#allocation3 + $0x1], 1 }
  0x5e   :  { %146 = vsyncpa [#allocation4], 1 }
  0x5f   :  { %148 = vsyncpa [#allocation4 + $0x1], 1 }

// kernel: rel_learnable_decoder_layer.3
= control target key start
LH: loop header
LB: loop body
LE: loop exit
PB: predicated region body
PF: predicated region fallthrough
CT: control target
= control target key end

     0   :  { %7 = vsyncpa [#allocation3], 0  ;;  %s288_s0 = inlined_call_operand.hbm [shape: f32[16,16], index: 0, kind: input, shape index: {}]   ;;  %s289_s1 = inlined_call_operand.hbm [shape: bf16[16,48], index: 1, kind: input, shape index: {}]   ;;  %s290_s2 = inlined_call_operand.hbm [shape: bf16[16,48], index: 2, kind: output, shape index: {}]  }
   0x1   :  { %8 = vsyncpa [#allocation6], 0 }
   0x2   :  { %9 = vsyncpa [#allocation4], 0  ;;  %s222_s9 = smov [#allocation2]   ;;  %s150_s13 = scalar_lea.hbm %s288_s0, 256 }
   0x3   :  { %s15_s10 = sshll.u32 %s222_s9, 4  ;;  %p151_p0 = scmp.ne.s32.totalorder %s288_s0, %s150_s13  ;;  %s16_s10 = int_to_ptr.vmem [resolvable:$true] %s15_s10 }
   0x4   :  { %p154_p1 = scmp.lt.u32.totalorder %s150_s13, %s288_s0 }
   0x6   :  { %p156_p2 = pnand %p154_p1, %p151_p0 }
   0x8   :  { %159 = shalt.err (!%p156_p2)
}
   0x9   :  { %s160_s18 = scalar_lea.vmem %s16_s10, 256  ;;  %p165_p4 = scmp.lt.s32.totalorder %s16_s10, %s16_s10 }
   0xa   :  { %p161_p3 = scmp.ne.s32.totalorder %s16_s10, %s160_s18  ;;  %p166_p5 = scmp.lt.s32.totalorder %s160_s18, %s160_s18 }
   0xc   :  { %p167_p6 = por %p166_p5, %p165_p4 }
   0xe   :  { %p168_p7 = pnand %p167_p6, %p161_p3 }
  0x10   :  { %171 = shalt.err (!%p168_p7)
}
  0x11   :  { %s223_s19 = smov 128   ;;  %s224_s20 = smov 8  }
  0x12   :  { %21 = dma.hbm_to_vmem [thread:$0]  %s288_s0, 256, %s16_s10, [#allocation3], %s223_s19, %s223_s19, %s224_s20  }
  0x13   :  { %s225_s23 = smov [#allocation5]   ;;  %s172_s27 = scalar_lea.hbm %s289_s1, 128 }
  0x14   :  { %s27_s24 = sshll.u32 %s225_s23, 4  ;;  %p173_p8 = scmp.ne.s32.totalorder %s289_s1, %s172_s27  ;;  %s28_s24 = int_to_ptr.vmem [resolvable:$true] %s27_s24 }
  0x15   :  { %p176_p9 = scmp.lt.u32.totalorder %s172_s27, %s289_s1 }
  0x17   :  { %p178_p10 = pnand %p176_p9, %p173_p8 }
  0x19   :  { %181 = shalt.err (!%p178_p10)
}
  0x1a   :  { %s182_s4 = scalar_lea.vmem %s28_s24, 128  ;;  %p187_p12 = scmp.lt.s32.totalorder %s28_s24, %s28_s24 }
  0x1b   :  { %p183_p11 = scmp.ne.s32.totalorder %s28_s24, %s182_s4  ;;  %p188_p13 = scmp.lt.s32.totalorder %s182_s4, %s182_s4 }
  0x1d   :  { %p189_p0 = por %p188_p13, %p187_p12 }
  0x1f   :  { %p190_p1 = pnand %p189_p0, %p183_p11 }
  0x21   :  { %193 = shalt.err (!%p190_p1)
}
  0x22   :  { %s226_s0 = smov 64   ;;  %s227_s5 = smov 4  }
  0x23   :  { %33 = dma.hbm_to_vmem [thread:$0]  %s289_s1, 128, %s28_s24, [#allocation6], %s226_s0, %s226_s0, %s227_s5  }
  0x24   :  { %216 = dma.done.wait [#allocation3], 256  }
  0x25   :  { %217 = vsyncadd [#allocation3], 4294967040 }
  0x26   :  { %218 = dma.done.wait [#allocation6], 128  }
  0x27   :  { %219 = vsyncadd [#allocation6], 4294967168  ;;  %v228_v0 = vmov 0.0   ;;  %vm229_vm0 = vmmov 0   ;;  %v149_v1 = vld [vmem:[#allocation5] sm:$0xff]   ;;  %v41_v2 = vld [vmem:[#allocation2] sm:$0xff] }
  0x28   :  { %134 = vmatprep.subr.bf16.mxu0 %v228_v0  ;;  %136 = vmatprep.mubr.msk.bf16.mxu0 %vm229_vm0, %v228_v0  ;;  %v42_v3 = vld [vmem:[#allocation2 + $0x8] sm:$0xff]  ;;  %vm52_vm1 = vcmask 130048   ;;  %vm105_vm2 = vcmask 388096   ;;  %s230_s8 = smov [#allocation7]  }
  0x29   :  { %135 = vmatpush3.bf16.msra.mxu0 %v149_v1  ;;  %v43_v4 = vpack.c.bf16 %v42_v3, %v41_v2  ;;  %s113_s9 = sshll.u32 %s230_s8, 4  ;;  %s114_s9 = int_to_ptr.vmem [resolvable:$true] %s113_s9 }
  0x2a   :  { %s194_s1 = scalar_lea.vmem %s114_s9, 128  ;;  %p199_p3 = scmp.lt.s32.totalorder %s114_s9, %s114_s9 }
  0x2b   :  { %p195_p2 = scmp.ne.s32.totalorder %s114_s9, %s194_s1  ;;  %p200_p4 = scmp.lt.s32.totalorder %s194_s1, %s194_s1 }
  0x2c   :  { %137 = vmatmul.mubr.msk.bf16.vlgmr.msra.gmra.mrb[0].mxu0 %vm52_vm1, %v43_v4 }
  0x2d   :  { %p201_p5 = por %p200_p4, %p199_p3 }
  0x2f   :  { %p202_p6 = pnand %p201_p5, %p195_p2 }
  0xff   :  { %v90_v5 = vpop.f32.mrb[0].mxu0 }
 0x100   :  { %v130_v6 = vpack.c.bf16 %v90_v5, %v90_v5  ;;  %v138_v7 = vpop.f32.mrb[1].mxu0 }
 0x101   :  { %v93_v8 = vpop.f32.mrb[2].mxu0 }
 0x102   :  { %v131_v9 = vpack.c.bf16 %v93_v8, %v93_v8  ;;  %v139_v10 = vpop.f32.mrb[3].mxu0  ;;  %106 = vst.msk [vmem:[#allocation7] sm:$0xf] %vm105_vm2, %v130_v6 }
 0x104   :  { %107 = vst.msk [vmem:[#allocation7 + $0x4] sm:$0xf] %vm105_vm2, %v131_v9 }
 0x105   :  { %205 = shalt.err (!%p202_p6)
}
 0x106   :  { %s206_s12 = scalar_lea.hbm %s290_s2, 128 }
 0x107   :  { %p207_p7 = scmp.ne.s32.totalorder %s290_s2, %s206_s12  ;;  %p210_p8 = scmp.lt.u32.totalorder %s206_s12, %s290_s2 }
 0x109   :  { %p212_p9 = pnand %p210_p8, %p207_p7 }
 0x10b   :  { %215 = shalt.err (!%p212_p9)
}
 0x10c   :  { %119 = dma.vmem_to_hbm [thread:$0]  %s114_s9, 128, %s290_s2, [#allocation4], %s226_s0, %s226_s0, %s227_s5  }
 0x10d   :  { %220 = dma.done.wait [#allocation4], 128  }
 0x10e   :  { %221 = vsyncadd [#allocation4], 4294967168 }
 0x10f   :  { %123 = vsyncpa [#allocation3], 1 }
 0x110   :  { %124 = vsyncpa [#allocation6], 1 }
 0x111   :  { %125 = vsyncpa [#allocation4], 1 }

// kernel: rel_learnable_decoder_layer.5
= control target key start
LH: loop header
LB: loop body
LE: loop exit
PB: predicated region body
PF: predicated region fallthrough
CT: control target
= control target key end

     0   :  { %12 = vsyncpa [#allocation3], 0  ;;  %s728_s0 = inlined_call_operand.hbm [shape: f32[16,16], index: 0, kind: input, shape index: {}]   ;;  %s729_s1 = inlined_call_operand.hbm [shape: f32[1,16], index: 1, kind: input, shape index: {}]   ;;  %s730_s2 = inlined_call_operand.hbm [shape: f32[1,16], index: 2, kind: input, shape index: {}]   ;;  %s731_s3 = inlined_call_operand.hbm [shape: bf16[16,32], index: 3, kind: input, shape index: {}]   ;;  %s732_s4 = inlined_call_operand.hbm [shape: f32[1,32], index: 4, kind: input, shape index: {}]   ;;  %s733_s5 = inlined_call_operand.hbm [shape: bf16[32,16], index: 5, kind: input, shape index: {}]   ;;  %s734_s6 = inlined_call_operand.hbm [shape: f32[1,16], index: 6, kind: input, shape index: {}]   ;;  %s735_s7 = inlined_call_operand.hbm [shape: f32[16,16], index: 7, kind: output, shape index: {}]  }
   0x1   :  { %13 = vsyncpa [#allocation6], 0 }
   0x2   :  { %14 = vsyncpa [#allocation9], 0 }
   0x3   :  { %15 = vsyncpa [#allocation12], 0 }
   0x4   :  { %16 = vsyncpa [#allocation4], 0  ;;  %s551_s24 = smov [#allocation5]   ;;  %s552_s26 = smov [#allocation8]  }
   0x5   :  { %s35_s25 = sshll.u32 %s551_s24, 4  ;;  %s54_s27 = sshll.u32 %s552_s26, 4  ;;  %s36_s25 = int_to_ptr.vmem [resolvable:$true] %s35_s25  ;;  %s605_s27 = int_to_ptr.vmem [resolvable:$true] %s54_s27 }
   0x6   :  { %s365_s30 = scalar_lea.hbm %s729_s1, 16 }
   0x7   :  { %p366_p0 = scmp.ne.s32.totalorder %s729_s1, %s365_s30  ;;  %p369_p1 = scmp.lt.u32.totalorder %s365_s30, %s729_s1 }
   0x9   :  { %p371_p2 = pnand %p369_p1, %p366_p0 }
   0xb   :  { %374 = shalt.err (!%p371_p2)
}
   0xc   :  { %s375_s12 = scalar_lea.vmem %s36_s25, 16  ;;  %s379_s13 = scalar_lea.vmem %s36_s25, 32 }
   0xd   :  { %p376_p3 = scmp.ne.s32.totalorder %s36_s25, %s375_s12  ;;  %p380_p4 = scmp.lt.s32.totalorder %s36_s25, %s36_s25 }
   0xe   :  { %p381_p5 = scmp.lt.s32.totalorder %s379_s13, %s375_s12 }
  0x10   :  { %p382_p6 = por %p381_p5, %p380_p4 }
  0x12   :  { %p383_p7 = pnand %p382_p6, %p376_p3 }
  0x14   :  { %386 = shalt.err (!%p383_p7)
}
  0x15   :  { %38 = dma.hbm_to_vmem [thread:$0]  %s729_s1, 16, %s36_s25, [#allocation6]  }
  0x16   :  { %s387_s18 = scalar_lea.hbm %s731_s3, 128 }
  0x17   :  { %p388_p8 = scmp.ne.s32.totalorder %s731_s3, %s387_s18  ;;  %p391_p9 = scmp.lt.u32.totalorder %s387_s18, %s731_s3 }
  0x19   :  { %p393_p10 = pnand %p391_p9, %p388_p8 }
  0x1b   :  { %396 = shalt.err (!%p393_p10)
}
  0x1c   :  { %s397_s23 = scalar_lea.vmem %s605_s27, 128  ;;  %p402_p12 = scmp.lt.s32.totalorder %s605_s27, %s605_s27 }
  0x1d   :  { %p398_p11 = scmp.ne.s32.totalorder %s605_s27, %s397_s23  ;;  %p403_p13 = scmp.lt.s32.totalorder %s397_s23, %s397_s23 }
  0x1f   :  { %p404_p0 = por %p403_p13, %p402_p12 }
  0x21   :  { %p405_p1 = pnand %p404_p0, %p398_p11 }
  0x23   :  { %408 = shalt.err (!%p405_p1)
}
  0x24   :  { %s553_s1 = smov 64   ;;  %s554_s24 = smov 4  }
  0x25   :  { %60 = dma.hbm_to_vmem [thread:$0]  %s731_s3, 128, %s605_s27, [#allocation9], %s553_s1, %s553_s1, %s554_s24  }
  0x26   :  { %s555_s28 = smov [#allocation11]   ;;  %s556_s30 = smov [#allocation2]  }
  0x27   :  { %s76_s29 = sshll.u32 %s555_s28, 4  ;;  %s22_s8 = sshll.u32 %s556_s30, 4  ;;  %s77_s29 = int_to_ptr.vmem [resolvable:$true] %s76_s29  ;;  %s636_s8 = int_to_ptr.vmem [resolvable:$true] %s22_s8 }
  0x28   :  { %s409_s11 = scalar_lea.hbm %s733_s5, 256 }
  0x29   :  { %p410_p2 = scmp.ne.s32.totalorder %s733_s5, %s409_s11  ;;  %p413_p3 = scmp.lt.u32.totalorder %s409_s11, %s733_s5 }
  0x2b   :  { %p415_p4 = pnand %p413_p3, %p410_p2 }
  0x2d   :  { %418 = shalt.err (!%p415_p4)
}
  0x2e   :  { %s419_s3 = scalar_lea.vmem %s77_s29, 256  ;;  %p424_p6 = scmp.lt.s32.totalorder %s77_s29, %s77_s29 }
  0x2f   :  { %p420_p5 = scmp.ne.s32.totalorder %s77_s29, %s419_s3  ;;  %p425_p7 = scmp.lt.s32.totalorder %s419_s3, %s419_s3 }
  0x31   :  { %p426_p8 = por %p425_p7, %p424_p6 }
  0x33   :  { %p427_p9 = pnand %p426_p8, %p420_p5 }
  0x35   :  { %430 = shalt.err (!%p427_p9)
}
  0x36   :  { %82 = dma.hbm_to_vmem [thread:$0]  %s733_s5, 256, %s77_s29, [#allocation12], %s553_s1, %s553_s1, %s554_s24  }
  0x37   :  { %s431_s19 = scalar_lea.hbm %s728_s0, 256 }
  0x38   :  { %p432_p10 = scmp.ne.s32.totalorder %s728_s0, %s431_s19  ;;  %p435_p11 = scmp.lt.u32.totalorder %s431_s19, %s728_s0 }
  0x3a   :  { %p437_p12 = pnand %p435_p11, %p432_p10 }
  0x3c   :  { %440 = shalt.err (!%p437_p12)
}
  0x3d   :  { %s441_s25 = scalar_lea.vmem %s636_s8, 256  ;;  %p446_p0 = scmp.lt.s32.totalorder %s636_s8, %s636_s8 }
  0x3e   :  { %p442_p13 = scmp.ne.s32.totalorder %s636_s8, %s441_s25  ;;  %p447_p1 = scmp.lt.s32.totalorder %s441_s25, %s441_s25 }
  0x40   :  { %p448_p2 = por %p447_p1, %p446_p0 }
  0x42   :  { %p449_p3 = pnand %p448_p2, %p442_p13 }
  0x44   :  { %452 = shalt.err (!%p449_p3)
}
  0x45   :  { %s557_s5 = smov 128   ;;  %s558_s1 = smov 8  }
  0x46   :  { %28 = dma.hbm_to_vmem [thread:$0]  %s728_s0, 256, %s636_s8, [#allocation3], %s557_s5, %s557_s5, %s558_s1  }
  0x47   :  { %s559_s28 = smov [#allocation7]   ;;  %s560_s30 = smov [#allocation10]  }
  0x48   :  { %s45_s29 = sshll.u32 %s559_s28, 4  ;;  %s67_s9 = sshll.u32 %s560_s30, 4  ;;  %s46_s29 = int_to_ptr.vmem [resolvable:$true] %s45_s29  ;;  %s68_s9 = int_to_ptr.vmem [resolvable:$true] %s67_s9 }
  0x49   :  { %s453_s12 = scalar_lea.hbm %s730_s2, 16 }
  0x4a   :  { %p454_p4 = scmp.ne.s32.totalorder %s730_s2, %s453_s12  ;;  %p457_p5 = scmp.lt.u32.totalorder %s453_s12, %s730_s2 }
  0x4c   :  { %p459_p6 = pnand %p457_p5, %p454_p4 }
  0x4e   :  { %462 = shalt.err (!%p459_p6)
}
  0x4f   :  { %s463_s0 = scalar_lea.vmem %s46_s29, 16  ;;  %s467_s8 = scalar_lea.vmem %s46_s29, 32 }
  0x50   :  { %p464_p7 = scmp.ne.s32.totalorder %s46_s29, %s463_s0  ;;  %p468_p8 = scmp.lt.s32.totalorder %s46_s29, %s46_s29 }
  0x51   :  { %p469_p9 = scmp.lt.s32.totalorder %s467_s8, %s463_s0 }
  0x53   :  { %p470_p10 = por %p469_p9, %p468_p8 }
  0x55   :  { %p471_p11 = pnand %p470_p10, %p464_p7 }
  0x57   :  { %474 = shalt.err (!%p471_p11)
}
  0x58   :  { %48 = dma.hbm_to_vmem [thread:$0]  %s730_s2, 16, %s46_s29, [#allocation6]  }
  0x59   :  { %s475_s19 = scalar_lea.hbm %s732_s4, 16 }
  0x5a   :  { %p476_p12 = scmp.ne.s32.totalorder %s732_s4, %s475_s19  ;;  %p479_p13 = scmp.lt.u32.totalorder %s475_s19, %s732_s4 }
  0x5c   :  { %p481_p0 = pnand %p479_p13, %p476_p12 }
  0x5e   :  { %484 = shalt.err (!%p481_p0)
}
  0x5f   :  { %s485_s25 = scalar_lea.vmem %s68_s9, 16  ;;  %s489_s24 = scalar_lea.vmem %s68_s9, 32 }
  0x60   :  { %p486_p1 = scmp.ne.s32.totalorder %s68_s9, %s485_s25  ;;  %p490_p2 = scmp.lt.s32.totalorder %s68_s9, %s68_s9 }
  0x61   :  { %p491_p3 = scmp.lt.s32.totalorder %s489_s24, %s485_s25 }
  0x63   :  { %p492_p4 = por %p491_p3, %p490_p2 }
  0x65   :  { %p493_p5 = pnand %p492_p4, %p486_p1 }
  0x67   :  { %496 = shalt.err (!%p493_p5)
}
  0x68   :  { %70 = dma.hbm_to_vmem [thread:$0]  %s732_s4, 16, %s68_s9, [#allocation9]  }
  0x69   :  { %s561_s28 = smov [#allocation13]   ;;  %s497_s11 = scalar_lea.hbm %s734_s6, 16 }
  0x6a   :  { %s89_s29 = sshll.u32 %s561_s28, 4  ;;  %p498_p6 = scmp.ne.s32.totalorder %s734_s6, %s497_s11  ;;  %s90_s29 = int_to_ptr.vmem [resolvable:$true] %s89_s29 }
  0x6b   :  { %p501_p7 = scmp.lt.u32.totalorder %s497_s11, %s734_s6 }
  0x6d   :  { %p503_p8 = pnand %p501_p7, %p498_p6 }
  0x6f   :  { %506 = shalt.err (!%p503_p8)
}
  0x70   :  { %s507_s3 = scalar_lea.vmem %s90_s29, 16  ;;  %s511_s4 = scalar_lea.vmem %s90_s29, 32 }
  0x71   :  { %p508_p9 = scmp.ne.s32.totalorder %s90_s29, %s507_s3  ;;  %p512_p10 = scmp.lt.s32.totalorder %s90_s29, %s90_s29 }
  0x72   :  { %p513_p11 = scmp.lt.s32.totalorder %s511_s4, %s507_s3 }
  0x74   :  { %p514_p12 = por %p513_p11, %p512_p10 }
  0x76   :  { %p515_p13 = pnand %p514_p12, %p508_p9 }
  0x78   :  { %518 = shalt.err (!%p515_p13)
}
  0x79   :  { %92 = dma.hbm_to_vmem [thread:$0]  %s734_s6, 16, %s90_s29, [#allocation12]  }
  0x7a   :  { %541 = dma.done.wait [#allocation3], 256  }
  0x7b   :  { %542 = vsyncadd [#allocation3], 4294967040 }
  0x7c   :  { %543 = dma.done.wait [#allocation6], 32  }
  0x7d   :  { %544 = vsyncadd [#allocation6], 4294967264 }
  0x7e   :  { %545 = dma.done.wait [#allocation9], 144  }
  0x7f   :  { %546 = vsyncadd [#allocation9], 4294967152 }
  0x80   :  { %547 = dma.done.wait [#allocation12], 272  }
  0x81   :  { %548 = vsyncadd [#allocation12], 4294967024  ;;  %vm117_vm0 = vcmask 130048   ;;  %v115_v0 = vld [vmem:[#allocation2] sm:$0xff]  ;;  %v116_v1 = vld [vmem:[#allocation2 + $0x8] sm:$0xff]  ;;  %v562_v15 = vmov 0.0  }
  0x82   :  { %v118_v2 = vsel %vm117_vm0, %v115_v0, 0.0  ;;  %v121_v3 = vsel %vm117_vm0, %v116_v1, 0.0  ;;  %v358_v14 = vld [vmem:[#allocation8] sm:$0xff]   ;;  %330 = vmatprep.subr.bf16.mxu0 %v562_v15  ;;  %vm563_vm1 = vmmov 0   ;;  %336 = vmatprep.subr.bf16.mxu1 %v562_v15  ;;  %v316_v24 = vld [vmem:[#allocation5] ss:$0 sm:$0xff] }
  0x83   :  { %119 = vadd.xlane.f32.xlu0 %v118_v2  ;;  %332 = vmatprep.mubr.msk.bf16.mxu0 %vm563_vm1, %v562_v15  ;;  %v317_v28 = vld [vmem:[#allocation7] ss:$0 sm:$0xff]  ;;  %v359_v33 = vld [vmem:[#allocation11] sm:$0xff]   ;;  %v360_v34 = vld [vmem:[#allocation11 + $0x8] sm:$0xff]   ;;  %vm249_vm2 = vcmask 261120   ;;  %s564_s6 = smov [#allocation14]  }
  0x84   :  { %331 = vmatpush3.bf16.msra.mxu0 %v358_v14  ;;  %340 = vmatprep.mubr.msk.bf16.mxu1 %vm563_vm1, %v562_v15  ;;  %v318_v35 = vld [vmem:[#allocation10] ss:$0 sm:$0xff]  ;;  %v321_v45 = vld [vmem:[#allocation13] ss:$0 sm:$0xff]  ;;  %s301_s8 = sshll.u32 %s564_s6, 4  ;;  %s302_s8 = int_to_ptr.vmem [resolvable:$true] %s301_s8 }
  0x85   :  { %337 = vmatpush3.bf16.msra.mxu1 %v359_v33  ;;  %s519_s27 = scalar_lea.vmem %s302_s8, 256  ;;  %p524_p1 = scmp.lt.s32.totalorder %s302_s8, %s302_s8 }
  0x86   :  { %338 = vmatprep.subr.bf16.mxu1 %v562_v15  ;;  %p520_p0 = scmp.ne.s32.totalorder %s302_s8, %s519_s27  ;;  %p525_p2 = scmp.lt.s32.totalorder %s519_s27, %s519_s27 }
  0x87   :  { %122 = vadd.xlane.f32.xlu0 %v121_v3 }
  0x88   :  { %p526_p3 = por %p525_p2, %p524_p1 }
  0x89   :  { %339 = vmatpush3.bf16.msra.mxu1 %v360_v34 }
  0x8a   :  { %p527_p4 = pnand %p526_p3, %p520_p0 }
 0x110   :  { %v120_v4 = vpop.xlane.xlu0 %119 }
 0x111   :  { %v125_v5 = vmul.f32 0.0625, %v120_v4 }
 0x113   :  { %v127_v6 = vsub.f32 %v115_v0, %v125_v5 }
 0x114   :  { %v123_v7 = vpop.xlane.xlu0 %122 }
 0x115   :  { %v126_v8 = vmul.f32 0.0625, %v123_v7  ;;  %v129_v9 = vmul.f32 %v127_v6, %v127_v6 }
 0x117   :  { %v128_v10 = vsub.f32 %v116_v1, %v126_v8  ;;  %v131_v11 = vsel %vm117_vm0, %v129_v9, 0.0 }
 0x118   :  { %132 = vadd.xlane.f32.xlu1 %v131_v11 }
 0x119   :  { %v130_v12 = vmul.f32 %v128_v10, %v128_v10 }
 0x11b   :  { %v134_v13 = vsel %vm117_vm0, %v130_v12, 0.0 }
 0x11c   :  { %135 = vadd.xlane.f32.xlu1 %v134_v13 }
 0x1a5   :  { %v133_v16 = vpop.xlane.xlu1 %132 }
 0x1a6   :  { %v137_v17 = vmul.f32 0.0625, %v133_v16 }
 0x1a8   :  { %v139_v18 = vadd.f32 1e-05, %v137_v17 }
 0x1a9   :  { %v136_v19 = vpop.xlane.xlu1 %135 }
 0x1aa   :  { %361 = vrsqrt.f32 %v139_v18  ;;  %v138_v20 = vmul.f32 0.0625, %v136_v19 }
 0x1ac   :  { %v140_v21 = vadd.f32 1e-05, %v138_v20 }
 0x1ae   :  { %363 = vrsqrt.f32 %v140_v21 }
 0x1b4   :  { %v362_v22 = vpop.eup %361 }
 0x1b5   :  { %v143_v23 = vmul.f32 %v362_v22, %v127_v6 }
 0x1b7   :  { %v152_v27 = vmul.f32 %v316_v24, %v143_v23 }
 0x1b8   :  { %v364_v25 = vpop.eup %363 }
 0x1b9   :  { %v144_v26 = vmul.f32 %v364_v25, %v128_v10  ;;  %v161_v30 = vadd.f32 %v317_v28, %v152_v27 }
 0x1bb   :  { %v153_v29 = vmul.f32 %v316_v24, %v144_v26 }
 0x1bd   :  { %v162_v31 = vadd.f32 %v317_v28, %v153_v29 }
 0x1bf   :  { %v163_v32 = vpack.c.bf16 %v162_v31, %v161_v30 }
 0x1c1   :  { %333 = vmatmul.mubr.msk.bf16.vlgmr.msra.gmra.mrb[0].mxu0 %vm117_vm0, %v163_v32 }
 0x294   :  { %v216_v36 = vpop.f32.mrb[0].mxu0 }
 0x295   :  { %v217_v37 = vadd.f32 %v318_v35, %v216_v36  ;;  %v334_v38 = vpop.f32.mrb[1].mxu0 }
 0x296   :  { %v219_v39 = vpop.f32.mrb[2].mxu0 }
 0x297   :  { %v220_v40 = vadd.f32 %v318_v35, %v219_v39  ;;  %v335_v41 = vpop.f32.mrb[3].mxu0  ;;  %v223_v42 = vmax.f32 %v217_v37, 0.0 }
 0x299   :  { %v224_v43 = vmax.f32 %v220_v40, 0.0 }
 0x29b   :  { %v225_v44 = vpack.c.bf16 %v224_v43, %v223_v42 }
 0x29d   :  { %341 = vmatmul.mubr.msk.bf16.vlgmr.msra.gmra.mrb[0].mxu1 %vm249_vm2, %v225_v44 }
 0x370   :  { %v287_v46 = vpop.f32.mrb[0].mxu1 }
 0x371   :  { %v288_v47 = vadd.f32 %v321_v45, %v287_v46  ;;  %v342_v48 = vpop.f32.mrb[1].mxu1 }
 0x372   :  { %v290_v49 = vpop.f32.mrb[2].mxu1 }
 0x373   :  { %294 = vst.msk [vmem:[#allocation14] sm:$0xff] %vm117_vm0, %v288_v47  ;;  %v291_v50 = vadd.f32 %v321_v45, %v290_v49  ;;  %v343_v51 = vpop.f32.mrb[3].mxu1 }
 0x375   :  { %295 = vst.msk [vmem:[#allocation14 + $0x8] sm:$0xff] %vm117_vm0, %v291_v50 }
 0x376   :  { %530 = shalt.err (!%p527_p4)
}
 0x377   :  { %s531_s18 = scalar_lea.hbm %s735_s7, 256 }
 0x378   :  { %p532_p5 = scmp.ne.s32.totalorder %s735_s7, %s531_s18  ;;  %p535_p6 = scmp.lt.u32.totalorder %s531_s18, %s735_s7 }
 0x37a   :  { %p537_p7 = pnand %p535_p6, %p532_p5 }
 0x37c   :  { %540 = shalt.err (!%p537_p7)
}
 0x37d   :  { %307 = dma.vmem_to_hbm [thread:$0]  %s302_s8, 256, %s735_s7, [#allocation4], %s557_s5, %s557_s5, %s558_s1  }
 0x37e   :  { %549 = dma.done.wait [#allocation4], 256  }
 0x37f   :  { %550 = vsyncadd [#allocation4], 4294967040 }
 0x380   :  { %311 = vsyncpa [#allocation3], 1 }
 0x381   :  { %312 = vsyncpa [#allocation6], 1 }
 0x382   :  { %313 = vsyncpa [#allocation9], 1 }
 0x383   :  { %314 = vsyncpa [#allocation12], 1 }
 0x384   :  { %315 = vsyncpa [#allocation4], 1 }

// kernel: rel_learnable_decoder_layer.4
= control target key start
LH: loop header
LB: loop body
LE: loop exit
PB: predicated region body
PF: predicated region fallthrough
CT: control target
= control target key end

     0   :  { %s2901_s0 = inlined_call_operand.hbm [shape: bf16[2,2,8,8], index: 0, kind: input, shape index: {}]   ;;  %s2902_s1 = inlined_call_operand.hbm [shape: bf16[2,2,8,8], index: 1, kind: input, shape index: {}]   ;;  %s2903_s2 = inlined_call_operand.hbm [shape: bf16[2,2,8,8], index: 2, kind: input, shape index: {}]   ;;  %s2904_s3 = inlined_call_operand.hbm [shape: f32[2,8,16], index: 3, kind: input, shape index: {}]   ;;  %s2905_s4 = inlined_call_operand.hbm [shape: bf16[2,8,8], index: 4, kind: input, shape index: {}]   ;;  %s2906_s5 = inlined_call_operand.hbm [shape: f32[2,8], index: 5, kind: input, shape index: {}]   ;;  %s2907_s6 = inlined_call_operand.hbm [shape: f32[2,8], index: 6, kind: input, shape index: {}]   ;;  %s2908_s7 = inlined_call_operand.hbm [shape: s8[8,8], index: 7, kind: input, shape index: {}]   ;;  %s2909_s8 = inlined_call_operand.hbm [shape: bf16[16,16], index: 8, kind: input, shape index: {}]   ;;  %s2910_s9 = inlined_call_operand.hbm [shape: f32[1,16], index: 9, kind: input, shape index: {}]   ;;  %s2911_s10 = inlined_call_operand.hbm [shape: f32[1,16], index: 10, kind: input, shape index: {}]   ;;  %s2912_s11 = inlined_call_operand.hbm [shape: f32[2,8,16], index: 11, kind: output, shape index: {}]  }
   0x1   :  { %2942 = sst [smem:[#allocation38_spill]] %s2902_s1 }
   0x2   :  { %2943 = sst [smem:[#allocation39_spill]] %s2903_s2 }
   0x3   :  { %2944 = sst [smem:[#allocation40_spill]] %s2904_s3 }
   0x4   :  { %2945 = sst [smem:[#allocation41_spill]] %s2905_s4 }
   0x5   :  { %2946 = sst [smem:[#allocation42_spill]] %s2906_s5 }
   0x6   :  { %2947 = sst [smem:[#allocation43_spill]] %s2908_s7 }
   0x7   :  { %2948 = sst [smem:[#allocation44_spill]] %s2910_s9 }
   0x8   :  { %2949 = sst [smem:[#allocation45_spill]] %s2912_s11 }
   0x9   :  { %16 = vsyncpa [#allocation4], 0 }
   0xa   :  { %18 = vsyncpa [#allocation4 + $0x1], 0 }
   0xb   :  { %19 = vsyncpa [#allocation7], 0 }
   0xc   :  { %21 = vsyncpa [#allocation7 + $0x1], 0 }
   0xd   :  { %22 = vsyncpa [#allocation10], 0 }
   0xe   :  { %24 = vsyncpa [#allocation10 + $0x1], 0 }
   0xf   :  { %25 = vsyncpa [#allocation13], 0 }
  0x10   :  { %26 = vsyncpa [#allocation16], 0 }
  0x11   :  { %27 = vsyncpa [#allocation19], 0 }
  0x12   :  { %28 = vsyncpa [#allocation5], 0 }
  0x13   :  { %30 = vsyncpa [#allocation5 + $0x1], 0  ;;  %s2250_s17 = smov 0   ;;  %s2252_s18 = smov 0  }
  0x14   :  { %s2254_s19 = smov 0   ;;  %s2256_s20 = smov 0  }
  0x15   :  { %s2258_s21 = smov 0   ;;  %s2260_s22 = smov 0  }
  0x16 LB: > { %2950 = sst [smem:[#allocation30_spill]] %s2144_s17  ;;  %s2281_s23 = sadd.s32 4294967295, %s2164_s22   ;;  %s2164_s22 = sphi %s2260_s22, %s36_s22   ;;  %s2160_s21 = sphi %s2258_s21, %s3011_s21   ;;  %s2156_s20 = sphi %s2256_s20, %s3010_s20   ;;  %s2152_s19 = sphi %s2254_s19, %s3014_s19   ;;  %s2148_s18 = sphi %s2252_s18, %s3013_s18   ;;  %s2144_s17 = sphi %s2250_s17, %s3012_s17  }
  0x17   : > { %2951 = sst [smem:[#allocation31_spill]] %s2156_s20  ;;  %p1456_p0 = scmp.ge.s32.totalorder %s2164_s22, 1 }
  0x18   : > { %2952 = sst [smem:[#allocation32_spill]] %s2160_s21  ;;  %p2917_p1 = scmp.eq.s32.totalorder %s2281_s23, 0 }
  0x19   : > { %p341_p2 = scmp.lt.s32.totalorder %s2164_s22, 3  ;;  %s2166_s25 = smov [#allocation11]  }
  0x1a   : > { %s353_s26 = sshll.u32 %s2166_s25, 4  ;;  %s2167_s28 = smov [#allocation12]   ;;  %s2290_s26 = int_to_ptr.vmem [resolvable:$true] %s353_s26 }
  0x1b   : > { %p2286_p3 = pnand %p1456_p0, %p341_p2  ;;  %s367_s29 = sshll.u32 %s2167_s28, 4  ;;  %s2301_s29 = int_to_ptr.vmem [resolvable:$true] %s367_s29 }
  0x1c   : > { %s2168_s30 = smov [#allocation15]   ;;  %s2956_s4 = sld [smem:[#allocation41_spill]] }
  0x1d   : > { %s2953_s24 = scalar_select %p2286_p3, 1, 0 }
  0x1e   : > { %p1609_p4 = pneg %p2286_p3  ;;  %s2303_s12 = sshll.u32 %s2168_s30, 4  ;;  %s392_s12 = int_to_ptr.vmem [resolvable:$true] %s2303_s12 }
  0x1f   : > { %2954 = sst [smem:[#allocation33_spill]] %s2953_s24 }
  0x20   : > { %p2297_p6 = pnand %p1609_p4, %p2917_p1 }
  0x22   : > { %s2955_s27 = scalar_select %p2297_p6, 1, 0 }
  0x23   : > { %s1742_s15 = scalar_lea.hbm %s2956_s4, 128  ;;  %p2313_p8 = pneg %p2297_p6 }
  0x24   : > { %p1743_p7 = scmp.ne.s32.totalorder %s2956_s4, %s1742_s15  ;;  %p1749_p11 = scmp.lt.u32.totalorder %s1742_s15, %s2956_s4 }
  0x25   : > { %s2957_s11 = scalar_select %p2313_p8, 1, 0 }
  0x26   : > { %p1745_p9 = pnand %p2313_p8, %p1743_p7 }
  0x28   : > { %p1746_p10 = pneg %p1745_p9 }
  0x2a   : > { %p1751_p12 = pnand %p1749_p11, %p1746_p10 }
  0x2c   : > { %1754 = shalt.err (!%p1751_p12)
}
  0x2d   : > { %s1755_s13 = scalar_lea.vmem %s2290_s26, 128  ;;  %p1763_p4 = scmp.lt.s32.totalorder %s2290_s26, %s2290_s26 }
  0x2e   : > { %p1756_p13 = scmp.ne.s32.totalorder %s2290_s26, %s1755_s13  ;;  %p1764_p5 = scmp.lt.s32.totalorder %s1755_s13, %s1755_s13 }
  0x30   : > { %p1758_p0 = pnand %p1756_p13, %p2313_p8  ;;  %p1765_p7 = por %p1764_p5, %p1763_p4 }
  0x32   : > { %p1759_p2 = pneg %p1758_p0 }
  0x34   : > { %p1766_p9 = pnand %p1765_p7, %p1759_p2 }
  0x36   : > { %1769 = shalt.err (!%p1766_p9)
}
  0x37   : > { %s2919_s14 = smov 64   ;;  %s2921_s15 = smov 4  }
  0x38   : > { %1612 = dma.hbm_to_vmem [thread:$0]  (!%p2297_p6), %s2956_s4, 128, %s2290_s26, [#allocation10], %s2919_s14, %s2919_s14, %s2921_s15  }
  0x39   : > { %s2958_s5 = sld [smem:[#allocation42_spill]] }
  0x3f   : > { %s1770_s13 = scalar_lea.hbm %s2958_s5, 32 }
  0x40   : > { %p1771_p5 = scmp.ne.s32.totalorder %s2958_s5, %s1770_s13  ;;  %p1777_p12 = scmp.lt.u32.totalorder %s1770_s13, %s2958_s5 }
  0x42   : > { %p1773_p10 = pnand %p1771_p5, %p2313_p8 }
  0x44   : > { %p1774_p11 = pneg %p1773_p10 }
  0x46   : > { %p1779_p13 = pnand %p1777_p12, %p1774_p11 }
  0x48   : > { %1782 = shalt.err (!%p1779_p13)
}
  0x49   : > { %s1783_s26 = scalar_lea.vmem %s2301_s29, 32  ;;  %p1791_p7 = scmp.lt.s32.totalorder %s2301_s29, %s2301_s29 }
  0x4a   : > { %p1784_p0 = scmp.ne.s32.totalorder %s2301_s29, %s1783_s26  ;;  %p1792_p9 = scmp.lt.s32.totalorder %s1783_s26, %s1783_s26 }
  0x4c   : > { %p1786_p2 = pnand %p1784_p0, %p2313_p8  ;;  %p1793_p5 = por %p1792_p9, %p1791_p7 }
  0x4e   : > { %p1787_p4 = pneg %p1786_p2 }
  0x50   : > { %p1794_p10 = pnand %p1793_p5, %p1787_p4 }
  0x52   : > { %1797 = shalt.err (!%p1794_p10)
}
  0x53   : > { %1615 = dma.hbm_to_vmem [thread:$0]  (!%p2297_p6), %s2958_s5, 32, %s2301_s29, [#allocation13]  }
  0x54   : > { %s2959_s7 = sld [smem:[#allocation43_spill]] }
  0x5a   : > { %s1798_s16 = scalar_lea.hbm %s2959_s7, 32 }
  0x5b   : > { %p1799_p11 = scmp.ne.s32.totalorder %s2959_s7, %s1798_s16  ;;  %p1805_p0 = scmp.lt.u32.totalorder %s1798_s16, %s2959_s7 }
  0x5d   : > { %p1801_p12 = pnand %p1799_p11, %p2313_p8 }
  0x5f   : > { %p1802_p13 = pneg %p1801_p12 }
  0x61   : > { %p1807_p2 = pnand %p1805_p0, %p1802_p13 }
  0x63   : > { %1810 = shalt.err (!%p1807_p2)
}
  0x64   : > { %s1811_s26 = scalar_lea.vmem %s392_s12, 32  ;;  %p1819_p5 = scmp.lt.s32.totalorder %s392_s12, %s392_s12 }
  0x65   : > { %p1812_p4 = scmp.ne.s32.totalorder %s392_s12, %s1811_s26  ;;  %p1820_p10 = scmp.lt.s32.totalorder %s1811_s26, %s1811_s26 }
  0x67   : > { %p1814_p7 = pnand %p1812_p4, %p2313_p8  ;;  %p1821_p1 = por %p1820_p10, %p1819_p5 }
  0x69   : > { %p1815_p9 = pneg %p1814_p7 }
  0x6b   : > { %p1822_p3 = pnand %p1821_p1, %p1815_p9 }
  0x6d   : > { %1825 = shalt.err (!%p1822_p3)
}
  0x6e   : > { %1621 = dma.hbm_to_vmem [thread:$0]  (!%p2297_p6), %s2959_s7, 32, %s392_s12, [#allocation16]  }
  0x6f   : > { %s2171_s3 = smov [#allocation18]   ;;  %s2960_s9 = sld [smem:[#allocation44_spill]] }
  0x70   : > { %s415_s20 = sshll.u32 %s2171_s3, 4  ;;  %s416_s20 = int_to_ptr.vmem [resolvable:$true] %s415_s20 }
  0x75   : > { %s1826_s25 = scalar_lea.hbm %s2960_s9, 16 }
  0x76   : > { %p1827_p11 = scmp.ne.s32.totalorder %s2960_s9, %s1826_s25  ;;  %p1833_p12 = scmp.lt.u32.totalorder %s1826_s25, %s2960_s9 }
  0x78   : > { %p1829_p1 = pnand %p1827_p11, %p2313_p8 }
  0x7a   : > { %p1830_p3 = pneg %p1829_p1 }
  0x7c   : > { %p1835_p13 = pnand %p1833_p12, %p1830_p3 }
  0x7e   : > { %1838 = shalt.err (!%p1835_p13)
}
  0x7f   : > { %s1839_s12 = scalar_lea.vmem %s416_s20, 16  ;;  %s1846_s29 = scalar_lea.vmem %s416_s20, 32 }
  0x80   : > { %p1840_p0 = scmp.ne.s32.totalorder %s416_s20, %s1839_s12  ;;  %p1847_p7 = scmp.lt.s32.totalorder %s416_s20, %s416_s20 }
  0x81   : > { %p1848_p9 = scmp.lt.s32.totalorder %s1846_s29, %s1839_s12 }
  0x82   : > { %p1842_p2 = pnand %p1840_p0, %p2313_p8 }
  0x83   : > { %p1849_p5 = por %p1848_p9, %p1847_p7 }
  0x84   : > { %p1843_p4 = pneg %p1842_p2 }
  0x86   : > { %p1850_p10 = pnand %p1849_p5, %p1843_p4 }
  0x88   : > { %1853 = shalt.err (!%p1850_p10)
}
  0x89   : > { %1627 = dma.hbm_to_vmem [thread:$0]  (!%p2297_p6), %s2960_s9, 16, %s416_s20, [#allocation19]  }
  0x8a   : > { %s1455_s24 = sadd.s32 4294967294, %s2164_s22   ;;  %s48_s16 = sadd.s32 1, %s2160_s21 }
  0x8b   : > { %p50_p11 = scmp.ge.s32.totalorder %s48_s16, 2  ;;  %s57_s25 = sadd.s32 1, %s2152_s19 }
  0x8c   : > { %p64_p1 = scmp.ne.s32.totalorder %s2152_s19, %s2148_s18  ;;  %p65_p3 = scmp.eq.s32.totalorder %s2164_s22, 0 }
  0x8d   : > { %s3016_s16 = smov (%p50_p11, %s48_s16), 0  ;;  %p70_p13 = scmp.ne.s32.totalorder %s2148_s18, %s2144_s17 }
  0x8e   : > { %2961 = sst [smem:[#allocation34_spill]] %s3016_s16  ;;  %p2405_p12 = por %p65_p3, %p64_p1 }
  0x8f   : > { %s52_s20 = ssub.s32 %s2160_s21, %s3016_s16  ;;  %p328_p0 = scmp.eq.s32.totalorder %s2281_s23, 1 }
  0x90   : > { %p55_p2 = scmp.eq.s32.totalorder %s52_s20, 0  ;;  %p2963_p4 = scmp.eq.s32.totalorder %s2281_s23, 0 }
  0x91   : > { %p2420_p9 = por %p328_p0, %p64_p1  ;;  %p334_p5 = scmp.eq.s32.totalorder %s1455_s24, 1 }
  0x92   : > { %p2416_p7 = por %p2963_p4, %p70_p13  ;;  %p1655_p11 = scmp.lt.s32.totalorder %s2164_s22, 2 }
  0x93   : > { %s2965_s13 = scalar_select %p2420_p9, 1, 0 }
  0x94   : > { %s2964_s30 = scalar_select %p2416_p7, 1, 0 }
  0x95   : > { %2966 = sst [smem:[#allocation35_spill]] %s2965_s13  ;;  %p2427_p10 = por %p334_p5, %p70_p13 }
  0x96   : > { %s2425_s26 = scalar_select %p55_p2, %s2152_s19, %s57_s25  }
  0x97   : > { %s2968_s12 = scalar_select %p2427_p10, 1, 0 }
  0x98   : > { %2967 = sst [smem:[#allocation36_spill]] %s2425_s26  ;;  %s2923_s29 = sand.u32 1, %s2152_s19  }
  0x99   : > { %2969 = sst [smem:[#allocation37_spill]] %s2968_s12  ;;  %s2434_s2 = sshll.u32 %s2160_s21, 7 }
  0x9a   : > { %s2438_s3 = sshll.u32 %s2923_s29, 3  ;;  %p2442_p1 = pnand %p1655_p11, %p2405_p12 }
  0x9b   : > { %s2926_s24 = sand.u32 1, %s2164_s22   ;;  %s2971_s1 = sld [smem:[#allocation38_spill]] }
  0x9c   : > { %s2970_s20 = scalar_select %p2442_p1, 1, 0 }
  0x9d   : > { %s463_s4 = scalar_lea.vmem [#allocation6], %s2438_s3  ;;  %s2458_s28 = scalar_lea.sflag [#allocation7], %s2926_s24 }
  0x9e   : > { %s470_s29 = sshll.u32 %s463_s4, 4  ;;  %p2464_p12 = pneg %p2442_p1  ;;  %s2454_s29 = int_to_ptr.vmem [resolvable:$true] %s470_s29 }
  0xa0   : > { %s2972_s7 = scalar_select %p2464_p12, 1, 0 }
  0xa1   : > { %s2451_s15 = scalar_lea.hbm %s2971_s1, %s2434_s2  ;;  %s1859_s4 = scalar_lea.hbm %s2971_s1, 256 }
  0xa2   : > { %s1854_s5 = scalar_lea.hbm %s2451_s15, 128  ;;  %p1860_p2 = scmp.lt.u32.totalorder %s2451_s15, %s2971_s1 }
  0xa3   : > { %p1855_p3 = scmp.ne.s32.totalorder %s2451_s15, %s1854_s5  ;;  %p1861_p4 = scmp.lt.u32.totalorder %s1859_s4, %s1854_s5 }
  0xa4   : > { %p1863_p11 = scmp.lt.u32.totalorder %s1854_s5, %s2451_s15 }
  0xa5   : > { %p1857_p13 = pnand %p2464_p12, %p1855_p3  ;;  %p1862_p5 = por %p1861_p4, %p1860_p2 }
  0xa7   : > { %p1858_p0 = pneg %p1857_p13  ;;  %p1864_p10 = por %p1863_p11, %p1862_p5 }
  0xa9   : > { %p1865_p9 = pnand %p1864_p10, %p1858_p0 }
  0xab   : > { %1868 = shalt.err (!%p1865_p9)
}
  0xac   : > { %s1869_s24 = scalar_lea.vmem %s2454_s29, 128  ;;  %s2172_s14 = smov [#allocation6]  }
  0xad   : > { %p1870_p3 = scmp.ne.s32.totalorder %s2454_s29, %s1869_s24  ;;  %s1874_s25 = sshll.u32 %s2172_s14, 4  ;;  %s1875_s25 = int_to_ptr.vmem [resolvable:$false] %s1874_s25 }
  0xae   : > { %s1876_s9 = scalar_lea.vmem %s1875_s25, 256  ;;  %p1877_p6 = scmp.lt.s32.totalorder %s2454_s29, %s1875_s25 }
  0xaf   : > { %p1872_p13 = pnand %p1870_p3, %p2464_p12  ;;  %p1878_p8 = scmp.lt.s32.totalorder %s1876_s9, %s1869_s24 }
  0xb1   : > { %p1873_p7 = pneg %p1872_p13  ;;  %p1879_p2 = por %p1878_p8, %p1877_p6 }
  0xb3   : > { %p1880_p4 = pnand %p1879_p2, %p1873_p7 }
  0xb5   : > { %1883 = shalt.err (!%p1880_p4)
}
  0xb6   : > { %s2973_s5 = smov 4   ;;  %s2974_s16 = smov 64  }
  0xb7   : > { %1637 = dma.hbm_to_vmem [thread:$0]  (!%p2442_p1), %s2451_s15, 128, %s2454_s29, %s2458_s28, %s2974_s16, %s2974_s16, %s2973_s5  }
  0xb8   : > { %s2173_s4 = smov [#allocation14]   ;;  %s2174_s14 = smov [#allocation17]  }
  0xb9   : > { %s378_s1 = sshll.u32 %s2173_s4, 4  ;;  %s401_s21 = sshll.u32 %s2174_s14, 4  ;;  %s379_s1 = int_to_ptr.vmem [resolvable:$true] %s378_s1  ;;  %s402_s21 = int_to_ptr.vmem [resolvable:$true] %s401_s21 }
  0xba   : > { %s1884_s9 = scalar_lea.hbm %s2907_s6, 32  ;;  %p2975_p8 = scmp.ne.s32.totalorder %s2957_s11, 0 }
  0xbb   : > { %p1885_p6 = scmp.ne.s32.totalorder %s2907_s6, %s1884_s9  ;;  %p1891_p10 = scmp.lt.u32.totalorder %s1884_s9, %s2907_s6 }
  0xbd   : > { %p1887_p7 = pnand %p1885_p6, %p2975_p8 }
  0xbf   : > { %p1888_p9 = pneg %p1887_p7 }
  0xc1   : > { %p1893_p0 = pnand %p1891_p10, %p1888_p9 }
  0xc3   : > { %1896 = shalt.err (!%p1893_p0)
}
  0xc4   : > { %s1897_s15 = scalar_lea.vmem %s379_s1, 32  ;;  %p1905_p13 = scmp.lt.s32.totalorder %s379_s1, %s379_s1 }
  0xc5   : > { %p1898_p5 = scmp.ne.s32.totalorder %s379_s1, %s1897_s15  ;;  %p1906_p2 = scmp.lt.s32.totalorder %s1897_s15, %s1897_s15 }
  0xc7   : > { %p1900_p11 = pnand %p1898_p5, %p2975_p8  ;;  %p1907_p4 = por %p1906_p2, %p1905_p13 }
  0xc9   : > { %p1901_p3 = pneg %p1900_p11 }
  0xcb   : > { %p1908_p1 = pnand %p1907_p4, %p1901_p3 }
  0xcd   : > { %1911 = shalt.err (!%p1908_p1)
}
  0xce   : > { %p2976_p6 = scmp.ne.s32.totalorder %s2955_s27, 0  ;;  %s1912_s29 = scalar_lea.hbm %s2909_s8, 128 }
  0xcf   : > { %p1913_p7 = scmp.ne.s32.totalorder %s2909_s8, %s1912_s29  ;;  %p1919_p1 = scmp.lt.u32.totalorder %s1912_s29, %s2909_s8 }
  0xd0   : > { %1618 = dma.hbm_to_vmem [thread:$0]  (!%p2976_p6), %s2907_s6, 32, %s379_s1, [#allocation13]  }
  0xd1   : > { %p1915_p9 = pnand %p1913_p7, %p2975_p8 }
  0xd3   : > { %p1916_p10 = pneg %p1915_p9 }
  0xd5   : > { %p1921_p0 = pnand %p1919_p1, %p1916_p10 }
  0xd7   : > { %1924 = shalt.err (!%p1921_p0)
}
  0xd8   : > { %s1925_s9 = scalar_lea.vmem %s402_s21, 128  ;;  %p1933_p13 = scmp.lt.s32.totalorder %s402_s21, %s402_s21 }
  0xd9   : > { %p1926_p5 = scmp.ne.s32.totalorder %s402_s21, %s1925_s9  ;;  %p1934_p2 = scmp.lt.s32.totalorder %s1925_s9, %s1925_s9 }
  0xdb   : > { %p1928_p11 = pnand %p1926_p5, %p2975_p8  ;;  %p1935_p4 = por %p1934_p2, %p1933_p13 }
  0xdd   : > { %p1929_p3 = pneg %p1928_p11 }
  0xdf   : > { %p1936_p12 = pnand %p1935_p4, %p1929_p3 }
  0xe1   : > { %1939 = shalt.err (!%p1936_p12)
}
  0xe2   : > { %1624 = dma.hbm_to_vmem [thread:$0]  (!%p2976_p6), %s2909_s8, 128, %s402_s21, [#allocation16], %s2974_s16, %s2974_s16, %s2973_s5  }
  0xe3   : > { %s2175_s26 = smov [#allocation20]   ;;  %s1940_s29 = scalar_lea.hbm %s2911_s10, 16 }
  0xe4   : > { %s426_s12 = sshll.u32 %s2175_s26, 4  ;;  %p1941_p12 = scmp.ne.s32.totalorder %s2911_s10, %s1940_s29  ;;  %s427_s12 = int_to_ptr.vmem [resolvable:$true] %s426_s12 }
  0xe5   : > { %p1947_p10 = scmp.lt.u32.totalorder %s1940_s29, %s2911_s10 }
  0xe6   : > { %p1943_p7 = pnand %p1941_p12, %p2975_p8 }
  0xe8   : > { %p1944_p9 = pneg %p1943_p7 }
  0xea   : > { %p1949_p1 = pnand %p1947_p10, %p1944_p9 }
  0xec   : > { %1952 = shalt.err (!%p1949_p1)
}
  0xed   : > { %s1953_s21 = scalar_lea.vmem %s427_s12, 16  ;;  %s1960_s9 = scalar_lea.vmem %s427_s12, 32 }
  0xee   : > { %p1954_p0 = scmp.ne.s32.totalorder %s427_s12, %s1953_s21  ;;  %p1961_p3 = scmp.lt.s32.totalorder %s427_s12, %s427_s12 }
  0xef   : > { %p1962_p13 = scmp.lt.s32.totalorder %s1960_s9, %s1953_s21 }
  0xf0   : > { %p1956_p5 = pnand %p1954_p0, %p2975_p8 }
  0xf1   : > { %p1963_p2 = por %p1962_p13, %p1961_p3 }
  0xf2   : > { %p1957_p11 = pneg %p1956_p5 }
  0xf4   : > { %p1964_p4 = pnand %p1963_p2, %p1957_p11 }
  0xf6   : > { %1967 = shalt.err (!%p1964_p4)
}
  0xf7   : > { %1630 = dma.hbm_to_vmem [thread:$0]  (!%p2976_p6), %s2911_s10, 16, %s427_s12, [#allocation19]  }
  0xf8   : > { %s2552_s17 = scalar_lea.hbm %s2901_s0, %s2434_s2  ;;  %s441_s13 = scalar_lea.vmem [#allocation3], %s2438_s3 }
  0xf9   : > { %s449_s29 = sshll.u32 %s441_s13, 4  ;;  %s2977_s27 = sand.u32 1, %s2152_s19   ;;  %s2555_s29 = int_to_ptr.vmem [resolvable:$true] %s449_s29 }
  0xfa   : > { %s2559_s4 = scalar_lea.sflag [#allocation4], %s2977_s27  ;;  %s1968_s14 = scalar_lea.hbm %s2552_s17, 128 }
  0xfb   : > { %p1969_p8 = scmp.ne.s32.totalorder %s2552_s17, %s1968_s14  ;;  %p2978_p12 = scmp.ne.s32.totalorder %s2972_s7, 0 }
  0xfc   : > { %s1973_s24 = scalar_lea.hbm %s2901_s0, 256  ;;  %p1974_p9 = scmp.lt.u32.totalorder %s2552_s17, %s2901_s0 }
  0xfd   : > { %p1971_p6 = pnand %p1969_p8, %p2978_p12  ;;  %p1975_p10 = scmp.lt.u32.totalorder %s1973_s24, %s1968_s14 }
  0xfe   : > { %p1977_p0 = scmp.lt.u32.totalorder %s1968_s14, %s2552_s17 }
  0xff   : > { %p1972_p7 = pneg %p1971_p6  ;;  %p1976_p1 = por %p1975_p10, %p1974_p9 }
 0x101   : > { %p1978_p5 = por %p1977_p0, %p1976_p1 }
 0x103   : > { %p1979_p11 = pnand %p1978_p5, %p1972_p7 }
 0x105   : > { %1982 = shalt.err (!%p1979_p11)
}
 0x106   : > { %s1983_s1 = scalar_lea.vmem %s2555_s29, 128  ;;  %s2176_s15 = smov [#allocation3]  }
 0x107   : > { %p1984_p3 = scmp.ne.s32.totalorder %s2555_s29, %s1983_s1  ;;  %s1988_s26 = sshll.u32 %s2176_s15, 4  ;;  %s1989_s26 = int_to_ptr.vmem [resolvable:$false] %s1988_s26 }
 0x108   : > { %s1990_s11 = scalar_lea.vmem %s1989_s26, 256  ;;  %p1991_p4 = scmp.lt.s32.totalorder %s2555_s29, %s1989_s26 }
 0x109   : > { %p1986_p13 = pnand %p1984_p3, %p2978_p12  ;;  %p1992_p8 = scmp.lt.s32.totalorder %s1990_s11, %s1983_s1 }
 0x10b   : > { %p1987_p2 = pneg %p1986_p13  ;;  %p1993_p6 = por %p1992_p8, %p1991_p4 }
 0x10d   : > { %p1994_p9 = pnand %p1993_p6, %p1987_p2 }
 0x10f   : > { %1997 = shalt.err (!%p1994_p9)
}
 0x110   : > { %p2979_p7 = scmp.ne.s32.totalorder %s2970_s20, 0  ;;  %s2980_s14 = sld [smem:[#allocation39_spill]] }
 0x111   : > { %s484_s25 = scalar_lea.vmem [#allocation8], %s2438_s3 }
 0x112   : > { %1634 = dma.hbm_to_vmem [thread:$0]  (!%p2979_p7), %s2552_s17, 128, %s2555_s29, %s2559_s4, %s2974_s16, %s2974_s16, %s2973_s5  }
 0x113   : > { %s491_s24 = sshll.u32 %s484_s25, 4  ;;  %s2593_s24 = int_to_ptr.vmem [resolvable:$true] %s491_s24 }
 0x116   : > { %s2590_s12 = scalar_lea.hbm %s2980_s14, %s2434_s2  ;;  %s2003_s29 = scalar_lea.hbm %s2980_s14, 256 }
 0x117   : > { %s1998_s21 = scalar_lea.hbm %s2590_s12, 128  ;;  %p2004_p5 = scmp.lt.u32.totalorder %s2590_s12, %s2980_s14 }
 0x118   : > { %p1999_p10 = scmp.ne.s32.totalorder %s2590_s12, %s1998_s21  ;;  %p2005_p11 = scmp.lt.u32.totalorder %s2003_s29, %s1998_s21 }
 0x119   : > { %p2007_p13 = scmp.lt.u32.totalorder %s1998_s21, %s2590_s12 }
 0x11a   : > { %p2001_p1 = pnand %p1999_p10, %p2978_p12  ;;  %p2006_p3 = por %p2005_p11, %p2004_p5 }
 0x11c   : > { %p2002_p0 = pneg %p2001_p1  ;;  %p2008_p2 = por %p2007_p13, %p2006_p3 }
 0x11e   : > { %p2009_p4 = pnand %p2008_p2, %p2002_p0 }
 0x120   : > { %2012 = shalt.err (!%p2009_p4)
}
 0x121   : > { %s2013_s15 = scalar_lea.vmem %s2593_s24, 128  ;;  %s2177_s26 = smov [#allocation8]  }
 0x122   : > { %p2014_p8 = scmp.ne.s32.totalorder %s2593_s24, %s2013_s15  ;;  %s2018_s11 = sshll.u32 %s2177_s26, 4  ;;  %s2019_s11 = int_to_ptr.vmem [resolvable:$false] %s2018_s11 }
 0x123   : > { %s2020_s13 = scalar_lea.vmem %s2019_s11, 256  ;;  %p2021_p10 = scmp.lt.s32.totalorder %s2593_s24, %s2019_s11 }
 0x124   : > { %p2016_p6 = pnand %p2014_p8, %p2978_p12  ;;  %p2022_p1 = scmp.lt.s32.totalorder %s2020_s13, %s2013_s15 }
 0x126   : > { %p2017_p9 = pneg %p2016_p6  ;;  %p2023_p5 = por %p2022_p1, %p2021_p10 }
 0x128   : > { %p2024_p11 = pnand %p2023_p5, %p2017_p9 }
 0x12a   : > { %2027 = shalt.err (!%p2024_p11)
}
 0x12b   : > { %1640 = dma.hbm_to_vmem [thread:$0]  (!%p2979_p7), %s2590_s12, 128, %s2593_s24, %s2458_s28, %s2974_s16, %s2974_s16, %s2973_s5  }
 0x12c   : > { %s2981_s21 = sld [smem:[#allocation40_spill]]  ;;  %s505_s29 = scalar_lea.vmem [#allocation9], %s2438_s3 }
 0x12d   : > { %s513_s4 = sshll.u32 %s505_s29, 4  ;;  %s2983_s1 = sand.u32 1, %s2164_s22   ;;  %s514_s4 = int_to_ptr.vmem [resolvable:$true] %s513_s4 }
 0x12e   : > { %s502_s15 = scalar_lea.sflag [#allocation10], %s2983_s1 }
 0x132   : > { %s2982_s9 = smov %s2981_s21  ;;  %s2624_s17 = scalar_lea.hbm %s2981_s21, %s2434_s2 }
 0x133   : > { %s2028_s26 = scalar_lea.hbm %s2624_s17, 128  ;;  %s2033_s16 = scalar_lea.hbm %s2982_s9, 256 }
 0x134   : > { %p2029_p0 = scmp.ne.s32.totalorder %s2624_s17, %s2028_s26  ;;  %p2034_p2 = scmp.lt.u32.totalorder %s2624_s17, %s2982_s9 }
 0x135   : > { %p2035_p4 = scmp.lt.u32.totalorder %s2033_s16, %s2028_s26  ;;  %p2037_p6 = scmp.lt.u32.totalorder %s2028_s26, %s2624_s17 }
 0x136   : > { %p2031_p3 = pnand %p2029_p0, %p2978_p12 }
 0x137   : > { %p2036_p8 = por %p2035_p4, %p2034_p2 }
 0x138   : > { %p2032_p13 = pneg %p2031_p3 }
 0x139   : > { %p2038_p9 = por %p2037_p6, %p2036_p8 }
 0x13b   : > { %p2039_p10 = pnand %p2038_p9, %p2032_p13 }
 0x13d   : > { %2042 = shalt.err (!%p2039_p10)
}
 0x13e   : > { %s2043_s3 = scalar_lea.vmem %s514_s4, 128  ;;  %s2178_s24 = smov [#allocation9]  }
 0x13f   : > { %p2044_p1 = scmp.ne.s32.totalorder %s514_s4, %s2043_s3  ;;  %s2048_s11 = sshll.u32 %s2178_s24, 4  ;;  %s2049_s11 = int_to_ptr.vmem [resolvable:$false] %s2048_s11 }
 0x140   : > { %s2050_s13 = scalar_lea.vmem %s2049_s11, 256  ;;  %p2051_p0 = scmp.lt.s32.totalorder %s514_s4, %s2049_s11 }
 0x141   : > { %p2046_p5 = pnand %p2044_p1, %p2978_p12  ;;  %p2052_p3 = scmp.lt.s32.totalorder %s2050_s13, %s2043_s3 }
 0x143   : > { %p2047_p11 = pneg %p2046_p5  ;;  %p2053_p7 = por %p2052_p3, %p2051_p0 }
 0x145   : > { %p2054_p2 = pnand %p2053_p7, %p2047_p11 }
 0x147   : > { %2057 = shalt.err (!%p2054_p2)
}
 0x148   : > { %p2984_p4 = scmp.ne.s32.totalorder %s2970_s20, 0  ;;  %s2985_s27 = sld [smem:[#allocation33_spill]] }
 0x14a   : > { %1643 = dma.hbm_to_vmem [thread:$0]  (!%p2984_p4), %s2624_s17, 128, %s514_s4, %s502_s15  }
 0x14e   : > { %p2986_p13 = scmp.ne.s32.totalorder %s2985_s27, 0 }
 0x14f   : > { %s2649_s7 = sand.u32 (!%p2986_p13), 1, %s2148_s18   ;;  %p2987_p12 = scmp.ne.s32.totalorder (!%p2986_p13), %s2964_s30, 0 }
 0x150   : > { %522 = sbr.rel (%p2986_p13) target bundleno = 3954 (0xf72), region = 64  ;;  %s2652_s25 = sshll.u32 (!%p2986_p13), %s2649_s7, 3 }
 0x151   : > { %s525_s21 = scalar_lea.sflag (!%p2986_p13), [#allocation4], %s2649_s7  ;;  %s528_s29 = scalar_lea.vmem (!%p2986_p13), [#allocation3], %s2652_s25 }
 0x157   : > { %2111 = dma.done.wait (%p2987_p12), %s525_s21, 128  }
 0x158   : > { %2113 = vsyncadd (%p2987_p12), %s525_s21, 4294967168  ;;  %s533_s20 = sand.u32 1, %s2281_s23   ;;  %s537_s4 = scalar_lea.vmem [#allocation6], %s2652_s25 }
 0x159   : > { %s534_s17 = scalar_lea.sflag [#allocation7], %s533_s20 }
 0x15a   : > { %2115 = dma.done.wait (%p2987_p12), %s534_s17, 256  }
 0x15b   : > { %2117 = vsyncadd (%p2987_p12), %s534_s17, 4294967040  ;;  %s546_s1 = scalar_lea.vmem [#allocation8], %s2652_s25  ;;  %s552_s15 = scalar_lea.sflag [#allocation10], %s533_s20 }
 0x15c   : > { %s555_s26 = scalar_lea.vmem [#allocation9], %s2652_s25 }
 0x15d   : > { %2119 = dma.done.wait (%p2987_p12), %s552_s15, 128  }
 0x15e   : > { %2121 = vsyncadd (%p2987_p12), %s552_s15, 4294967168  ;;  %p2988_p7 = scmp.eq.s32.totalorder %s2281_s23, 0 }
 0x160   : > { %2123 = dma.done.wait (%p2988_p7), [#allocation10], 128   ;;  %p2989_p8 = pmov %p2988_p7 }
 0x161   : > { %p2990_p6 = pmov %p2988_p7 }
 0x162   : > { %2125 = vsyncadd (%p2989_p8), [#allocation10], 4294967168 }
 0x163   : > { %2127 = dma.done.wait (%p2990_p6), [#allocation13], 64   ;;  %p2991_p9 = pmov %p2990_p6 }
 0x164   : > { %p2992_p10 = pmov %p2990_p6 }
 0x165   : > { %2129 = vsyncadd (%p2991_p9), [#allocation13], 4294967232 }
 0x166   : > { %2131 = dma.done.wait (%p2992_p10), [#allocation16], 160   ;;  %p2993_p1 = pmov %p2990_p6 }
 0x168   : > { %2133 = vsyncadd (%p2993_p1), [#allocation16], 4294967136  ;;  %p2994_p5 = pmov %p2993_p1 }
 0x169   : > { %p2995_p11 = pmov %p2993_p1 }
 0x16a   : > { %2135 = dma.done.wait (%p2994_p5), [#allocation19], 32  }
 0x16b   : > { %2137 = vsyncadd (%p2995_p11), [#allocation19], 4294967264  ;;  %v2179_v0 = vmov 0.0   ;;  %vm2180_vm0 = vmmov 0   ;;  %vm660_vm1 = vcmask 64512   ;;  %v642_v2 = vld [vmem:[%s528_s29] sm:$0xff]   ;;  %v707_v15 = vlaneseq }
 0x16c   : > { %1529 = vmatprep.subr.bf16.mxu0 %v2179_v0  ;;  %1531 = vmatprep.mubr.msk.bf16.mxu0 %vm2180_vm0, %v2179_v0  ;;  %v654_v1 = vld [vmem:[#allocation11] sm:$0xf]  ;;  %v643_v4 = vunpack.c.l.bf16 %v642_v2  ;;  %v1490_v7 = vld [vmem:[#allocation14] ss:$0 sm:$0xff]  ;;  %s2181_s23 = smov 7   ;;  %s2182_s30 = smov 8   ;;  %v900_v25 = vunpack.c.h.bf16 %v642_v2 }
 0x16d   : > { %1535 = vmatprep.subr.bf16.mxu1 %v2179_v0  ;;  %1537 = vmatprep.mubr.msk.bf16.mxu1 %vm2180_vm0, %v2179_v0  ;;  %v665_v3 = vsel %vm660_vm1, %v654_v1, 0  ;;  %vm711_vm2 = vcmask 1047616   ;;  %v2704_v16 = vshrl.u32 %v707_v15, 7  ;;  %v652_v17 = vld [vmem:[%s537_s4] sm:$0xf]  ;;  %s2183_s28 = smov 121  }
 0x16e   : > { %1530 = vmatpush3.bf16.xpose.msra.mxu0 %v665_v3  ;;  %v644_v5 = vmul.f32 0.35355338, %v643_v4  ;;  %v1489_v18 = vld [vmem:[#allocation12] ss:$0 sm:$0xff]  ;;  %v789_v20 = vsel %vm660_vm1, %v652_v17, 0  ;;  %s2184_s5 = smov 127  }
 0x16f   : > { %1541 = vmatprep.subr.bf16.mxu0 %v2179_v0  ;;  %v709_v19 = vand.u32 1, %v2704_v16  ;;  %1536 = vmatpush3.bf16.xpose.msra.mxu1 %v789_v20  ;;  %v913_v22 = vld [vmem:[#allocation11 + $0x4] sm:$0xf]  ;;  %v2721_v31 = vmul.f32 0.35355338, %v900_v25  ;;  %v725_v44 = vshra.s32 %v2704_v16, 1 }
 0x170   : > { %v653_v6 = vpack.c.bf16 %v644_v5, %v644_v5  ;;  %v650_v21 = vadd.f32 %v1489_v18, %v644_v5  ;;  %1547 = vmatprep.subr.bf16.mxu1 %v2179_v0  ;;  %v923_v29 = vsel %vm660_vm1, %v913_v22, 0  ;;  %v1497_v47 = vld [vmem:[#allocation14 + $0x1] ss:$0 sm:$0xff]  ;;  %s2185_s16 = smov 122   ;;  %s2186_s2 = smov 126   ;;  %v744_v57 = vshra.s32 %v2704_v16, 2 }
 0x171   : > { %vm2711_vm3 = vcmp.gt.s32.totalorder %v709_v19, 0  ;;  %v911_v32 = vpack.c.bf16 %v2721_v31, %v2721_v31  ;;  %v726_v45 = vand.u32 1, %v725_v44  ;;  %s2187_s12 = smov 124   ;;  %v640_v18 = vld [vmem:[#allocation15] sm:$0x3]  ;;  %v2774_v19 = vand.u32 127, %v707_v15 }
 0x172   : > { %v651_v24 = vpack.c.bf16 %v650_v21, %v650_v21  ;;  %v2750_v58 = vand.u32 1, %v744_v57  ;;  %vm641_vm6 = vnez %v640_v18  ;;  %v2777_v20 = vadd.s32 1, %v2704_v16  ;;  %v1500_v18 = vld [vmem:[%s546_s1 + $0x4] sm:$0xf]  ;;  %s3000_s3 = sld [smem:[#allocation31_spill]]  ;;  %s3001_s24 = sld [smem:[#allocation35_spill]] }
 0x173   : > { %vm727_vm4 = vcmp.gt.s32.totalorder %v726_v45, 0  ;;  %v2188_v21 = vmov 0   ;;  %vm780_vm8 = vcmp.le.s32.totalorder %v2774_v19, %v2704_v16  ;;  %vm851_vm10 = vcmask 1043456   ;;  %s636_s13 = scalar_lea.vmem [#allocation21], %s2652_s25  ;;  %s3002_s20 = sld [smem:[#allocation45_spill]] }
 0x174   : > { %vm746_vm5 = vcmp.gt.s32.totalorder %v2750_v58, 0  ;;  %v831_v22 = vsel %vm641_vm6, 16843009, %v2188_v21  ;;  %vm782_vm7 = vcmp.eq.s32.totalorder %v2774_v19, %v2777_v20  ;;  %vm896_vm11 = vcmask 60416   ;;  %s1238_s27 = sshll.u32 %s636_s13, 4  ;;  %s2189_s25 = smov [#allocation21]   ;;  %s2853_s27 = int_to_ptr.vmem [resolvable:$true] %s1238_s27 }
 0x175   : > { %1532 = vmatmul.mubr.msk.bf16.vlgmr.msra.gmra.mrb[0].mxu0 %vm660_vm1, %v653_v6  ;;  %v1086_v16 = vsel %vm851_vm10, %v1500_v18, 0  ;;  %vm1135_vm12 = vcmask 126016   ;;  %vm1146_vm13 = vcmask 130048   ;;  %s2058_s15 = scalar_lea.vmem %s2853_s27, 128 }
 0x176   : > { %1543 = vmatprep.mubr.msk.bf16.mxu0 %vm2180_vm0, %v2179_v0  ;;  %1538 = vmatmul.mubr.msk.bf16.vlgmr.msra.gmra.mrb[0].mxu1 %vm660_vm1, %v651_v24  ;;  %v832_v24 = vunpack.c.0.s8 %v831_v22  ;;  %p2059_p0 = scmp.ne.s32.totalorder %s2853_s27, %s2058_s15 }
 0x177   : > { %1548 = vmatpush3.bf16.xpose.msra.mxu1 %v923_v29  ;;  %1549 = vmatprep.mubr.msk.bf16.mxu1 %vm2180_vm0, %v2179_v0 }
 0x178   : > { %1559 = vmatprep.subr.bf16.mxu1 %v2179_v0  ;;  %vm2789_vm9 = vcmp.ne.s32.totalorder %v832_v24, 0  ;;  %s1508_s11 = sshll.u32 %s3000_s3, 7  ;;  %p3004_p3 = scmp.ne.s32.totalorder %s3001_s24, 0 }
 0x179   : > { %s2851_s17 = scalar_lea.hbm %s3002_s20, %s1508_s11 }
 0x17a   : > { %p2060_p2 = pnand %p2059_p0, %p3004_p3 }
 0x17c   : > { %p2061_p4 = pneg %p2060_p2 }
 0x17e   : > { %1550 = vmatmul.mubr.msk.bf16.vlgmr.msra.gmra.mrb[4].mxu1 %vm660_vm1, %v911_v32 }
 0x17f   : > { %1561 = vmatprep.mubr.msk.bf16.mxu1 %vm2180_vm0, %v2179_v0  ;;  %1560 = vmatpush3.bf16.msra.mxu1 %v1086_v16 }
 0x248   : > { %v701_v8 = vpop.f32.mrb[0].mxu0 }
 0x249   : > { %v702_v9 = vadd.f32 %v1490_v7, %v701_v8  ;;  %v1533_v10 = vpop.f32.mrb[1].mxu0  ;;  %v2733_v34 = vpop.f32.mrb[0].mxu1 }
 0x24a   : > { %v704_v11 = vpop.f32.mrb[2].mxu0  ;;  %v1539_v35 = vpop.f32.mrb[1].mxu1 }
 0x24b   : > { %721 = vrot.lane.b32.xlu1 %v702_v9, %s2181_s23  ;;  %712 = vrot.lane.b32.xlu0 %v702_v9, %s2182_s30  ;;  %v1534_v12 = vpop.f32.mrb[3].mxu0  ;;  %v828_v36 = vpop.f32.mrb[2].mxu1 }
 0x24c   : > { %v1540_v37 = vpop.f32.mrb[3].mxu1 }
 0x251   : > { %v959_v38 = vpop.f32.mrb[4].mxu1 }
 0x252   : > { %v1551_v39 = vpop.f32.mrb[5].mxu1  ;;  %v960_v51 = vadd.f32 %v1497_v47, %v959_v38 }
 0x253   : > { %v962_v40 = vpop.f32.mrb[6].mxu1 }
 0x254   : > { %v1552_v41 = vpop.f32.mrb[7].mxu1  ;;  %v847_v40 = vld [vmem:[%s546_s1] sm:$0xf]  ;;  %s1224_s1 = scalar_lea.sflag [#allocation5], %s2649_s7 }
 0x255   : > { %v853_v41 = vsel %vm851_vm10, %v847_v40, 0 }
 0x256   : > { %1542 = vmatpush3.bf16.msra.mxu0 %v853_v41 }
 0x257   : > { %1553 = vmatprep.subr.bf16.mxu0 %v2179_v0 }
 0x2bd   : > { %v713_v13 = vpop.permute.xlu0 %712  ;;  %v722_v27 = vpop.permute.xlu1 %721 }
 0x2be   : > { %v714_v14 = vsel %vm711_vm2, %v713_v13, %v702_v9 }
 0x2bf   : > { %715 = vrot.lane.b32.xlu0 %v714_v14, %s2182_s30 }
 0x331   : > { %v716_v26 = vpop.permute.xlu0 %715 }
 0x332   : > { %v717_v28 = vsel %vm711_vm2, %v716_v26, %v702_v9 }
 0x333   : > { %v724_v30 = vsel %vm2711_vm3, %v717_v28, %v722_v27 }
 0x334   : > { %729 = vrot.lane.b32.xlu1 %v724_v30, %s2183_s28 }
 0x3a6   : > { %v730_v33 = vpop.permute.xlu1 %729 }
 0x3a7   : > { %732 = vrot.lane.b32.xlu0 %v730_v33, %s2182_s30 }
 0x3ab   : > { %740 = vrot.lane.b32.xlu0 %v724_v30, %s2184_s5 }
 0x419   : > { %v733_v42 = vpop.permute.xlu0 %732 }
 0x41a   : > { %v734_v43 = vsel %vm711_vm2, %v733_v42, %v730_v33 }
 0x41b   : > { %735 = vrot.lane.b32.xlu1 %v734_v43, %s2182_s30 }
 0x41d   : > { %v741_v48 = vpop.permute.xlu0 %740 }
 0x48d   : > { %v736_v46 = vpop.permute.xlu1 %735 }
 0x48e   : > { %v737_v49 = vsel %vm711_vm2, %v736_v46, %v730_v33 }
 0x48f   : > { %v743_v50 = vsel %vm727_vm4, %v737_v49, %v741_v48 }
 0x490   : > { %748 = vrot.lane.b32.xlu1 %v743_v50, %s2185_s16 }
 0x494   : > { %965 = vrot.lane.b32.xlu1 %v960_v51, %s2182_s30 }
 0x498   : > { %759 = vrot.lane.b32.xlu1 %v743_v50, %s2186_s2  ;;  %v1496_v50 = vld [vmem:[%s537_s4 + $0x4] sm:$0xf]  ;;  %s3003_s4 = smov %s3002_s20 }
 0x49c   : > { %972 = vrot.lane.b32.xlu1 %v960_v51, %s2181_s23 }
 0x502   : > { %v749_v52 = vpop.permute.xlu1 %748 }
 0x503   : > { %751 = vrot.lane.b32.xlu0 %v749_v52, %s2182_s30 }
 0x506   : > { %v966_v55 = vpop.permute.xlu1 %965 }
 0x507   : > { %v967_v56 = vsel %vm711_vm2, %v966_v55, %v960_v51 }
 0x50a   : > { %v760_v60 = vpop.permute.xlu1 %759 }
 0x50e   : > { %v973_v1 = vpop.permute.xlu1 %972 }
 0x575   : > { %v752_v53 = vpop.permute.xlu0 %751 }
 0x576   : > { %v753_v54 = vsel %vm711_vm2, %v752_v53, %v749_v52 }
 0x577   : > { %754 = vrot.lane.b32.xlu0 %v753_v54, %s2182_s30 }
 0x57b   : > { %968 = vrot.lane.b32.xlu0 %v967_v56, %s2182_s30 }
 0x5e9   : > { %v755_v59 = vpop.permute.xlu0 %754 }
 0x5ea   : > { %v756_v61 = vsel %vm711_vm2, %v755_v59, %v749_v52  ;;  %v1025_v52 = vsel %vm660_vm1, %v1496_v50, 0 }
 0x5eb   : > { %v762_v62 = vsel %vm746_vm5, %v756_v61, %v760_v60 }
 0x5ec   : > { %764 = vrot.lane.b32.xlu0 %v762_v62, %s2187_s12 }
 0x5ed   : > { %v969_v63 = vpop.permute.xlu0 %968 }
 0x5ee   : > { %v970_v2 = vsel %vm711_vm2, %v969_v63, %v960_v51  ;;  %v1495_v51 = vld [vmem:[#allocation12 + $0x1] ss:$0 sm:$0xff] }
 0x5ef   : > { %v975_v3 = vsel %vm2711_vm3, %v970_v2, %v973_v1  ;;  %v907_v53 = vadd.f32 %v1495_v51, %v2721_v31 }
 0x5f0   : > { %977 = vrot.lane.b32.xlu1 %v975_v3, %s2183_s28 }
 0x5f1   : > { %v908_v54 = vpack.c.bf16 %v907_v53, %v907_v53 }
 0x65e   : > { %v765_v4 = vpop.permute.xlu0 %764 }
 0x65f   : > { %767 = vrot.lane.b32.xlu0 %v765_v4, %s2182_s30 }
 0x662   : > { %v978_v5 = vpop.permute.xlu1 %977 }
 0x663   : > { %980 = vrot.lane.b32.xlu1 %v978_v5, %s2182_s30 }
 0x6d1   : > { %v768_v6 = vpop.permute.xlu0 %767 }
 0x6d2   : > { %v769_v7 = vsel %vm711_vm2, %v768_v6, %v765_v4 }
 0x6d3   : > { %770 = vrot.lane.b32.xlu0 %v769_v7, %s2182_s30 }
 0x6d5   : > { %v981_v8 = vpop.permute.xlu1 %980 }
 0x6d6   : > { %v982_v9 = vsel %vm711_vm2, %v981_v8, %v978_v5 }
 0x6d7   : > { %986 = vrot.lane.b32.xlu0 %v975_v3, %s2184_s5  ;;  %983 = vrot.lane.b32.xlu1 %v982_v9, %s2182_s30 }
 0x745   : > { %v771_v10 = vpop.permute.xlu0 %770 }
 0x746   : > { %v772_v11 = vsel %vm711_vm2, %v771_v10, %v765_v4 }
 0x747   : > { %774 = vrot.lane.b32.xlu1 %v772_v11, %s2183_s28 }
 0x749   : > { %v987_v12 = vpop.permute.xlu0 %986  ;;  %v984_v13 = vpop.permute.xlu1 %983 }
 0x74a   : > { %v985_v14 = vsel %vm711_vm2, %v984_v13, %v978_v5 }
 0x74b   : > { %v989_v17 = vsel %vm727_vm4, %v985_v14, %v987_v12 }
 0x74c   : > { %991 = vrot.lane.b32.xlu0 %v989_v17, %s2185_s16 }
 0x7b9   : > { %v775_v23 = vpop.permute.xlu1 %774 }
 0x7ba   : > { %v777_v25 = vrot.slane %v775_v23, 1 }
 0x7bc   : > { %v783_v26 = vsel %vm782_vm7, 0.0, %v777_v25 }
 0x7bd   : > { %v784_v15 = vsel %vm780_vm8, %v775_v23, %v783_v26  ;;  %v1731_v23 = vld [vmem:[#allocation17] sm:$0xff]  }
 0x7be   : > { %v826_v28 = vadd.f32 %v2733_v34, %v784_v15  ;;  %v992_v29 = vpop.permute.xlu0 %991 }
 0x7bf   : > { %994 = vrot.lane.b32.xlu0 %v992_v29, %s2182_s30 }
 0x7c0   : > { %v834_v30 = vsel %vm2789_vm9, -1e+30, %v826_v28 }
 0x7c1   : > { %v835_v32 = vsel %vm660_vm1, %v834_v30, -inf }
 0x7c2   : > { %836 = vmax.xlane.f32.xlu1 %v835_v32 }
 0x831   : > { %v995_v33 = vpop.permute.xlu0 %994 }
 0x832   : > { %v996_v35 = vsel %vm711_vm2, %v995_v33, %v992_v29 }
 0x833   : > { %997 = vrot.lane.b32.xlu1 %v996_v35, %s2182_s30 }
 0x84f   : > { %v837_v36 = vpop.xlane.xlu1 %836 }
 0x850   : > { %v838_v37 = vsub.f32 %v834_v30, %v837_v36  ;;  %v1190_v30 = vld [vmem:[%s555_s26] sm:$0xff]  ;;  %s2062_s26 = sshll.u32 %s2189_s25, 4  ;;  %s2063_s26 = int_to_ptr.vmem [resolvable:$false] %s2062_s26 }
 0x851   : > { %s2064_s23 = scalar_lea.vmem %s2063_s26, 256  ;;  %p2065_p13 = scmp.lt.s32.totalorder %s2853_s27, %s2063_s26 }
 0x852   : > { %v839_v38 = vmul.f32 1.442695, %v838_v37  ;;  %p2066_p12 = scmp.lt.s32.totalorder %s2064_s23, %s2058_s15 }
 0x854   : > { %1732 = vpow2.f32 %v839_v38  ;;  %p2067_p7 = por %p2066_p12, %p2065_p13 }
 0x856   : > { %p2068_p8 = pnand %p2067_p7, %p2061_p4 }
 0x85e   : > { %v1733_v34 = vpop.eup %1732 }
 0x85f   : > { %v841_v39 = vsel %vm660_vm1, %v1733_v34, 0.0 }
 0x860   : > { %842 = vadd.xlane.f32.xlu0 %v841_v39 }
 0x876   : > { %1000 = vrot.lane.b32.xlu0 %v989_v17, %s2186_s2 }
 0x8a5   : > { %v998_v43 = vpop.permute.xlu1 %997 }
 0x8a6   : > { %v999_v44 = vsel %vm711_vm2, %v998_v43, %v992_v29 }
 0x8ed   : > { %v843_v42 = vpop.xlane.xlu0 %842 }
 0x8ee   : > { %1734 = vrcp.f32 %v843_v42 }
 0x8f1   : > { %v1001_v45 = vpop.permute.xlu0 %1000 }
 0x8f2   : > { %v1003_v46 = vsel %vm746_vm5, %v999_v44, %v1001_v45 }
 0x8f3   : > { %1005 = vrot.lane.b32.xlu1 %v1003_v46, %s2187_s12 }
 0x8f8   : > { %v1735_v47 = vpop.eup %1734 }
 0x8f9   : > { %v845_v48 = vmul.f32 %v1735_v47, %v1733_v34  ;;  %v1505_v47 = vld [vmem:[#allocation18] ss:$0 sm:$0xff] }
 0x8fb   : > { %v846_v49 = vpack.c.bf16 %v845_v48, %v845_v48 }
 0x8fd   : > { %1544 = vmatmul.mubr.msk.bf16.vlgmr.msra.gmra.mrb[4].mxu0 %vm660_vm1, %v846_v49  ;;  %v1506_v49 = vld [vmem:[#allocation20] ss:$0 sm:$0xff] }
 0x8fe   : > { %1555 = vmatprep.mubr.msk.bf16.mxu0 %vm2180_vm0, %v2179_v0  ;;  %1554 = vmatpush3.bf16.xpose.msra.mxu0 %v1025_v52 }
 0x8ff   : > { %1565 = vmatprep.subr.bf16.mxu0 %v2179_v0 }
 0x905   : > { %1556 = vmatmul.mubr.msk.bf16.vlgmr.msra.gmra.mrb[8].mxu0 %vm660_vm1, %v908_v54 }
 0x906   : > { %1567 = vmatprep.mubr.msk.bf16.mxu0 %vm2180_vm0, %v2179_v0  ;;  %1566 = vmatpush3.bf16.msra.mxu0 %v1731_v23 }
 0x965   : > { %v1006_v55 = vpop.permute.xlu1 %1005 }
 0x966   : > { %1008 = vrot.lane.b32.xlu1 %v1006_v55, %s2182_s30 }
 0x9d0   : > { %v889_v56 = vpop.f32.mrb[4].mxu0 }
 0x9d1   : > { %v895_v57 = vpack.c.bf16 %v889_v56, %v889_v56  ;;  %v1545_v58 = vpop.f32.mrb[5].mxu0 }
 0x9d2   : > { %v892_v59 = vpop.f32.mrb[6].mxu0 }
 0x9d3   : > { %897 = vst.msk [vmem:[#allocation2] sm:$0xf] %vm896_vm11, %v895_v57  ;;  %v1546_v60 = vpop.f32.mrb[7].mxu0 }
 0x9d8   : > { %v1009_v31 = vpop.permute.xlu1 %1008  ;;  %v1061_v62 = vpop.f32.mrb[8].mxu0 }
 0x9d9   : > { %v1010_v61 = vsel %vm711_vm2, %v1009_v31, %v1006_v55  ;;  %v1557_v63 = vpop.f32.mrb[9].mxu0 }
 0x9da   : > { %1011 = vrot.lane.b32.xlu0 %v1010_v61, %s2182_s30  ;;  %v1064_v1 = vpop.f32.mrb[10].mxu0 }
 0x9db   : > { %v1558_v2 = vpop.f32.mrb[11].mxu0 }
 0xa4c   : > { %v1012_v0 = vpop.permute.xlu0 %1011 }
 0xa4d   : > { %v1013_v3 = vsel %vm711_vm2, %v1012_v0, %v1006_v55 }
 0xa4e   : > { %1015 = vrot.lane.b32.xlu1 %v1013_v3, %s2183_s28 }
 0xac0   : > { %v1016_v4 = vpop.permute.xlu1 %1015 }
 0xac1   : > { %v1018_v5 = vrot.slane %v1016_v4, 1 }
 0xac3   : > { %v1019_v6 = vsel %vm782_vm7, 0.0, %v1018_v5 }
 0xac4   : > { %v1020_v7 = vsel %vm780_vm8, %v1016_v4, %v1019_v6 }
 0xac5   : > { %v1062_v8 = vadd.f32 %v1061_v62, %v1020_v7 }
 0xac7   : > { %v1067_v9 = vsel %vm2789_vm9, -1e+30, %v1062_v8 }
 0xac8   : > { %v1068_v10 = vsel %vm660_vm1, %v1067_v9, -inf }
 0xac9   : > { %1069 = vmax.xlane.f32.xlu0 %v1068_v10 }
 0xb56   : > { %v1070_v11 = vpop.xlane.xlu0 %1069 }
 0xb57   : > { %v1071_v12 = vsub.f32 %v1067_v9, %v1070_v11 }
 0xb59   : > { %v1072_v13 = vmul.f32 1.442695, %v1071_v12 }
 0xb5b   : > { %1736 = vpow2.f32 %v1072_v13 }
 0xb65   : > { %v1737_v14 = vpop.eup %1736 }
 0xb66   : > { %v1074_v17 = vsel %vm660_vm1, %v1737_v14, 0.0 }
 0xb67   : > { %1075 = vadd.xlane.f32.xlu1 %v1074_v17 }
 0xbf4   : > { %v1076_v19 = vpop.xlane.xlu1 %1075 }
 0xbf5   : > { %1738 = vrcp.f32 %v1076_v19 }
 0xbff   : > { %v1739_v20 = vpop.eup %1738 }
 0xc00   : > { %v1078_v21 = vmul.f32 %v1739_v20, %v1737_v14 }
 0xc02   : > { %v1079_v22 = vpack.c.bf16 %v1078_v21, %v1078_v21 }
 0xc04   : > { %1562 = vmatmul.mubr.msk.bf16.vlgmr.msra.gmra.mrb[8].mxu1 %vm660_vm1, %v1079_v22 }
 0xcd7   : > { %v1122_v24 = vpop.f32.mrb[8].mxu1 }
 0xcd8   : > { %v1514_v25 = vpack.c.bf16 %v1122_v24, %v1122_v24  ;;  %v1563_v26 = vpop.f32.mrb[9].mxu1 }
 0xcd9   : > { %v1125_v15 = vpop.f32.mrb[10].mxu1 }
 0xcda   : > { %1132 = vrot.lane.b32.xlu0 %v1514_v25, %s2182_s30  ;;  %v1564_v27 = vpop.f32.mrb[11].mxu1 }
 0xd4c   : > { %v1133_v28 = vpop.permute.xlu0 %1132 }
 0xd4d   : > { %1136 = vst.msk [vmem:[#allocation2] sm:$0xf] %vm1135_vm12, %v1133_v28 }
 0xd54   : > { %v1137_v29 = vld [vmem:[#allocation2] sm:$0xf] }
 0xd55   : > { %1568 = vmatmul.mubr.msk.bf16.vlgmr.msra.gmra.mrb[12].mxu0 %vm1146_vm13, %v1137_v29 }
 0xe28   : > { %v1184_v32 = vpop.f32.mrb[12].mxu0 }
 0xe29   : > { %v1191_v33 = vadd.f32 %v1190_v30, %v1184_v32  ;;  %v1569_v35 = vpop.f32.mrb[13].mxu0 }
 0xe2a   : > { %v1187_v36 = vpop.f32.mrb[14].mxu0 }
 0xe2b   : > { %v1570_v37 = vpop.f32.mrb[15].mxu0  ;;  %v1192_v38 = vsel %vm1146_vm13, %v1191_v33, 0.0 }
 0xe2c   : > { %1193 = vadd.xlane.f32.xlu1 %v1192_v38 }
 0xeb9   : > { %v1194_v34 = vpop.xlane.xlu1 %1193 }
 0xeba   : > { %v1196_v39 = vmul.f32 0.0625, %v1194_v34 }
 0xebc   : > { %v1197_v40 = vsub.f32 %v1191_v33, %v1196_v39 }
 0xebe   : > { %v1198_v41 = vmul.f32 %v1197_v40, %v1197_v40 }
 0xec0   : > { %v1199_v42 = vsel %vm1146_vm13, %v1198_v41, 0.0 }
 0xec1   : > { %1200 = vadd.xlane.f32.xlu1 %v1199_v42 }
 0xf4e   : > { %v1201_v43 = vpop.xlane.xlu1 %1200 }
 0xf4f   : > { %v1202_v44 = vmul.f32 0.0625, %v1201_v43 }
 0xf51   : > { %v1203_v45 = vadd.f32 1e-05, %v1202_v44 }
 0xf53   : > { %1740 = vrsqrt.f32 %v1203_v45 }
 0xf5d   : > { %v1741_v46 = vpop.eup %1740 }
 0xf5e   : > { %v1205_v48 = vmul.f32 %v1741_v46, %v1197_v40 }
 0xf60   : > { %v1213_v50 = vmul.f32 %v1505_v47, %v1205_v48 }
 0xf62   : > { %v1221_v51 = vadd.f32 %v1506_v49, %v1213_v50 }
 0xf64   : > { %1222 = vst.msk [vmem:[%s636_s13] sm:$0xff] %vm1146_vm13, %v1221_v51 }
 0xf65   : > { %2071 = shalt.err (!%p2068_p8)
}
 0xf66   : > { %s2072_s7 = scalar_lea.hbm %s2851_s17, 128  ;;  %s2076_s5 = scalar_lea.hbm %s3003_s4, 256 }
 0xf67   : > { %p2073_p6 = scmp.ne.s32.totalorder %s2851_s17, %s2072_s7  ;;  %p2077_p1 = scmp.lt.u32.totalorder %s2851_s17, %s3003_s4 }
 0xf68   : > { %p2078_p5 = scmp.lt.u32.totalorder %s2076_s5, %s2072_s7  ;;  %p2080_p0 = scmp.lt.u32.totalorder %s2072_s7, %s2851_s17 }
 0xf69   : > { %p2074_p9 = pnand %p2073_p6, %p3004_p3 }
 0xf6a   : > { %p2079_p11 = por %p2078_p5, %p2077_p1 }
 0xf6b   : > { %p2075_p10 = pneg %p2074_p9 }
 0xf6c   : > { %p2081_p2 = por %p2080_p0, %p2079_p11 }
 0xf6e   : > { %p2082_p4 = pnand %p2081_p2, %p2075_p10 }
 0xf70   : > { %2085 = shalt.err (!%p2082_p4)
}
 0xf71   : > { %1607 = dma.vmem_to_hbm [thread:$0]  (%p3004_p3), %s2853_s27, 128, %s2851_s17, %s1224_s1  }
 0xf72 PF: > { %s3005_s12 = sld [smem:[#allocation30_spill]]  ;;  %s3006_s3 = sld [smem:[#allocation37_spill]] }
 0xf73   : > { %p3008_p12 = scmp.ge.s32.totalorder %s2164_s22, 2 }
 0xf78   : > { %s1250_s11 = sand.u32 1, %s3005_s12   ;;  %p3007_p13 = scmp.ne.s32.totalorder %s3006_s3, 0 }
 0xf79   : > { %s1251_s13 = scalar_lea.sflag [#allocation5], %s1250_s11 }
 0xf7a   : > { %p1645_p7 = pnand %p3008_p12, %p3007_p13 }
 0xf7c   : > { %2139 = dma.done.wait (!%p1645_p7), %s1251_s13, 128  }
 0xf7d   : > { %2141 = vsyncadd (!%p1645_p7), %s1251_s13, 4294967168  ;;  %s36_s22 = sadd.s32 1, %s2164_s22   ;;  %s3009_s24 = sld [smem:[#allocation36_spill]] }
 0xf7e   : > { %p33_p8 = scmp.ge.s32.totalorder %s36_s22, 4   ;;  %s3010_s20 = sld [smem:[#allocation32_spill]] }
 0xf7f   : > { %s3011_s21 = sld [smem:[#allocation34_spill]]  ;;  %s3012_s17 = smov %s2148_s18 }
 0xf80   : > { %s3013_s18 = smov %s2152_s19  ;;  %35 = sbr.rel (!%p33_p8) target bundleno = 22 (0x16), region = 179 }
 0xf83   : > { %s3014_s19 = smov %s3009_s24 }
 0xf87   :  { %1256 = vsyncpa [#allocation4], 1 }
 0xf88   :  { %1258 = vsyncpa [#allocation4 + $0x1], 1 }
 0xf89   :  { %1259 = vsyncpa [#allocation7], 1 }
 0xf8a   :  { %1261 = vsyncpa [#allocation7 + $0x1], 1 }
 0xf8b   :  { %1262 = vsyncpa [#allocation10], 1 }
 0xf8c   :  { %1264 = vsyncpa [#allocation10 + $0x1], 1 }
 0xf8d   :  { %1265 = vsyncpa [#allocation13], 1 }
 0xf8e   :  { %1266 = vsyncpa [#allocation16], 1 }
 0xf8f   :  { %1267 = vsyncpa [#allocation19], 1 }
 0xf90   :  { %1268 = vsyncpa [#allocation5], 1 }
 0xf91   :  { %1270 = vsyncpa [#allocation5 + $0x1], 1 }

</bundles_post_ra>
